<compile_context>
chip_gen: v6e
topology: v6e:2x2x1
jax: 0.10.0
libtpu: 0.0.40
codegen_flags: <defaults>
</compile_context>

<pallas_src>
import math

import jax
import jax.numpy as jnp
from jax import lax
from jax.experimental import pallas as pl
from jax.experimental.pallas import tpu as pltpu


def _vmem_capacity_bytes():
    """Physical VMEM of the local chip; conservative (v7x-sized) fallback."""
    try:
        return int(pltpu.get_tpu_info().vmem_capacity_bytes)
    except Exception:
        return 64 * 1024 * 1024


# ---------------------------------------------------------------- shared bits
def _fc(pooled, w1, w2):
    """y = sigmoid(relu(pooled @ w1.T) @ w2.T) on original PyTorch layouts.

    pooled: (B, C) f32 ; w1: (hidden, C) ; w2: (C, hidden) -> (B, C) f32.
    Contracting dim 1 of both operands lets the MXU consume the transposed
    weights natively (no host-side jnp.transpose launches).
    """
    h = lax.dot_general(pooled, w1, (((1,), (1,)), ((), ())),
                        preferred_element_type=jnp.float32)
    h = jnp.maximum(h, 0.0)
    y = lax.dot_general(h, w2, (((1,), (1,)), ((), ())),
                        preferred_element_type=jnp.float32)
    return jax.nn.sigmoid(y)


def _apply_scale(x_ref, y, o_ref, H, W, Bm):
    """out[b, c, h*W + w] = x[b, c, h*W + w] * y[h (or 0), w (or 0)].

    x_ref/o_ref: (Bt, C, H*W) VMEM refs. Applied as H static, 128-lane-aligned
    slices so no relayout/reshape of y is ever needed; each iteration is a
    clean vld -> vmul -> vst chain with short per-vreg live ranges.
    """
    for hrow in range(H):
        hy = 0 if Bm == 1 else hrow           # y's row dim is the model batch
        yr = y[hy:hy + 1, :]                  # (1, Cm); Cm == W or 1
        lo, hi = hrow * W, (hrow + 1) * W
        o_ref[:, :, lo:hi] = (x_ref[:, :, lo:hi] * yr).astype(o_ref.dtype)


# -------------------------------------------------- fully fused (x resident)
def _make_fused_kernel(H, W, Bm):
    def kernel(x_ref, w1_ref, w2_ref, o_ref):
        # x_ref/o_ref: (B, C, H*W), fully resident in VMEM (single launch,
        # single HBM read of x). Pool -> FC -> scale all in one body.
        inv_hw = 1.0 / float(x_ref.shape[-1])
        pooled = jnp.sum(x_ref[...].astype(jnp.float32), axis=-1) * inv_hw  # (B, C)
        y = _fc(pooled, w1_ref[...], w2_ref[...])                            # (B, C)
        _apply_scale(x_ref, y, o_ref, H, W, Bm)
    return kernel


# ------------------------------------------ fallback (large x): two passes
def _pool_kernel(x_ref, pooled_ref):
    # x_ref: (1, C, H*W) block for one image ; pooled_ref: (1, 1, C)
    inv_hw = 1.0 / float(x_ref.shape[-1])
    s = jnp.sum(x_ref[...].astype(jnp.float32), axis=-1) * inv_hw  # (1, C)
    pooled_ref[...] = jnp.reshape(s, pooled_ref.shape)


def _make_scale_kernel(H, W, Bm):
    def kernel(pooled_ref, w1_ref, w2_ref, x_ref, o_ref):
        # pooled/w1/w2: small untiled VMEM inputs; x_ref/o_ref: (Bt, C, H*W).
        # The tiny FC is recomputed every grid step (cheap) so the batch grid
        # axis stays "parallel"-safe on megacore without any cross-core sync.
        y = _fc(pooled_ref[...], w1_ref[...], w2_ref[...])
        _apply_scale(x_ref, y, o_ref, H, W, Bm)
    return kernel


# ------------------------------------------------------------------- wrapper
def se_block(x, w1, w2):
    """x: (B, C, H, W); w1: (C//r, C); w2: (C, C//r)  (PyTorch out x in layout)."""
    B, C, H, W = x.shape
    HW = H * W
    hidden = w1.shape[0]
    assert w1.shape == (hidden, C) and w2.shape == (C, hidden)
    # Faithful `x * y` broadcast (y has shape (B, C), aligned with x's
    # trailing (H, W)) is only shape-preserving when:
    assert B in (H, 1) and C in (W, 1), (
        "se_block's `x * y` broadcast (y has shape (B, C)) requires B to "
        "broadcast with H and C with W while keeping x's shape")

    x3 = x.reshape(B, C, HW)                     # lane-dense view (contiguous NCHW)
    itemsize = jnp.dtype(x.dtype).itemsize
    x_bytes = B * C * HW * itemsize
    w_bytes = (w1.size + w2.size) * jnp.dtype(w1.dtype).itemsize

    cap = _vmem_capacity_bytes()
    vmem_limit = int(0.75 * cap)                 # ~96 MiB v5e/v6e, ~48 MiB v7x

    vmem_specs3 = [pl.BlockSpec(memory_space=pltpu.MemorySpace.VMEM) for _ in range(3)]

    # ---------- path A: whole SE block in ONE pallas_call (x read from HBM once)
    fused_need = 2 * x_bytes + w_bytes + (2 << 20)   # x in + out + weights + slack
    if fused_need <= int(0.7 * cap):
        out3 = pl.pallas_call(
            _make_fused_kernel(H, W, B),
            out_shape=jax.ShapeDtypeStruct((B, C, HW), x.dtype),
            in_specs=vmem_specs3,
            out_specs=pl.BlockSpec(memory_space=pltpu.MemorySpace.VMEM),
            compiler_params=pltpu.CompilerParams(vmem_limit_bytes=vmem_limit),
        )(x3, w1, w2)
        return out3.reshape(B, C, H, W)

    # ---------- path B (large x): pool pass, then fused FC + scale pass
    pooled = pl.pallas_call(
        _pool_kernel,
        grid=(B,),
        in_specs=[pl.BlockSpec((1, C, HW), lambda b: (b, 0, 0))],
        out_specs=pl.BlockSpec((1, 1, C), lambda b: (b, 0, 0)),
        out_shape=jax.ShapeDtypeStruct((B, 1, C), jnp.float32),
        compiler_params=pltpu.CompilerParams(
            dimension_semantics=("parallel",), vmem_limit_bytes=vmem_limit),
    )(x3).reshape(B, C)

    # Batch-tile the scale pass: biggest Bt whose double-buffered in+out blocks
    # fit the VMEM budget, while keeping >=2 grid steps for v7x's two cores.
    img_bytes = C * HW * itemsize
    bt = 1
    for cand in range(max(1, B // 2), 0, -1):
        if (B % cand == 0 and
                4 * cand * img_bytes + w_bytes + B * C * 4 + (4 << 20) <= vmem_limit):
            bt = cand
            break

    out3 = pl.pallas_call(
        _make_scale_kernel(H, W, B),
        grid=(B // bt,),
        in_specs=vmem_specs3 + [pl.BlockSpec((bt, C, HW), lambda b: (b, 0, 0))],
        out_specs=pl.BlockSpec((bt, C, HW), lambda b: (b, 0, 0)),
        out_shape=jax.ShapeDtypeStruct((B, C, HW), x.dtype),
        compiler_params=pltpu.CompilerParams(
            dimension_semantics=("parallel",), vmem_limit_bytes=vmem_limit),
    )(pooled, w1, w2, x3)
    return out3.reshape(B, C, H, W)


if __name__ == "__main__":
    # channel must be >= ratio so channel // ratio >= 1
    C = 128
    ratio = 16
    hidden = C // ratio                      # 8
    # H == B and W == C so the module's `x * y` broadcast is valid (as PyTorch requires).
    B = 4
    H, W = B, C                              # H*W = 512 -> lane-dense blocks

    key = jax.random.PRNGKey(0)
    kx, k1, k2 = jax.random.split(key, 3)

    x = jax.random.normal(kx, (B, C, H, W), dtype=jnp.float32)

    # Deterministic init mimicking PyTorch Linear default: U(-1/sqrt(fan_in), 1/sqrt(fan_in))
    b1 = 1.0 / math.sqrt(C)
    w1 = jax.random.uniform(k1, (hidden, C), minval=-b1, maxval=b1, dtype=jnp.float32)
    b2 = 1.0 / math.sqrt(hidden)
    w2 = jax.random.uniform(k2, (C, hidden), minval=-b2, maxval=b2, dtype=jnp.float32)

    out = jax.jit(se_block)(x, w1, w2)
    jax.block_until_ready(out)

    # plain-JAX reference (same ops, same broadcast) for a sanity check
    pooled_ref = jnp.mean(x, axis=(2, 3))
    y_ref = jax.nn.sigmoid(jnp.maximum(pooled_ref @ w1.T, 0.0) @ w2.T)
    ref = x * y_ref
    assert out.shape == ref.shape and out.dtype == ref.dtype
    assert jnp.allclose(out, ref, atol=1e-3, rtol=1e-3)

    print("KERNEL_OK")
</pallas_src>

<mosaic_0001>
module attributes {stable_mosaic.version = 11 : i64} {
  func.func @kernel(%arg0: memref<4x128x512xf32, #tpu.memory_space<vmem>>, %arg1: memref<8x128xf32, #tpu.memory_space<vmem>>, %arg2: memref<128x8xf32, #tpu.memory_space<vmem>>, %arg3: memref<4x128x512xf32, #tpu.memory_space<vmem>>) attributes {dimension_semantics = [], scalar_prefetch = 0 : i64, scratch_operands = 0 : i64, tpu.core_type = #tpu.core_type<tc>} {
    %c0 = arith.constant 0 : index
    %c0_0 = arith.constant 0 : index
    %c0_1 = arith.constant 0 : index
    %0 = vector.load %arg0[%c0, %c0_0, %c0_1] : memref<4x128x512xf32, #tpu.memory_space<vmem>>, vector<4x128x512xf32>
    %cst = arith.constant dense<0.000000e+00> : vector<4x128xf32>
    %1 = vector.multi_reduction <add>, %0, %cst [2] : vector<4x128x512xf32> to vector<4x128xf32>
    %cst_2 = arith.constant 0.001953125 : f32
    %2 = vector.broadcast %cst_2 : f32 to vector<4x128xf32>
    %3 = arith.mulf %1, %2 : vector<4x128xf32>
    %c0_3 = arith.constant 0 : index
    %c0_4 = arith.constant 0 : index
    %4 = vector.load %arg1[%c0_3, %c0_4] : memref<8x128xf32, #tpu.memory_space<vmem>>, vector<8x128xf32>
    %c0_5 = arith.constant 0 : index
    %c0_6 = arith.constant 0 : index
    %5 = vector.load %arg2[%c0_5, %c0_6] : memref<128x8xf32, #tpu.memory_space<vmem>>, vector<128x8xf32>
    %cst_7 = arith.constant dense<0.000000e+00> : vector<4x8xf32>
    %6 = tpu.matmul %3, %4, %cst_7 {dimension_numbers = #tpu.dot_dimension_numbers<[1], [1], [0], [0], [0, 0, 1, 0], [], []>} : vector<4x128xf32>, vector<8x128xf32>, vector<4x8xf32> -> vector<4x8xf32>
    %cst_8 = arith.constant 0.000000e+00 : f32
    %7 = vector.broadcast %cst_8 : f32 to vector<4x8xf32>
    %8 = arith.maximumf %6, %7 : vector<4x8xf32>
    %cst_9 = arith.constant dense<0.000000e+00> : vector<4x128xf32>
    %9 = tpu.matmul %8, %5, %cst_9 {dimension_numbers = #tpu.dot_dimension_numbers<[1], [1], [0], [0], [0, 0, 1, 0], [], []>} : vector<4x8xf32>, vector<128x8xf32>, vector<4x128xf32> -> vector<4x128xf32>
    %10 = arith.negf %9 : vector<4x128xf32>
    %11 = math.exp %10 : vector<4x128xf32>
    %cst_10 = arith.constant 1.000000e+00 : f32
    %12 = vector.broadcast %cst_10 : f32 to vector<4x128xf32>
    %13 = arith.addf %12, %11 : vector<4x128xf32>
    %14 = arith.divf %12, %13 : vector<4x128xf32>
    %15 = vector.extract_strided_slice %14 {offsets = [0, 0], sizes = [1, 128], strides = [1, 1]} : vector<4x128xf32> to vector<1x128xf32>
    %c0_11 = arith.constant 0 : index
    %c0_12 = arith.constant 0 : index
    %c0_13 = arith.constant 0 : index
    %16 = vector.load %arg0[%c0_11, %c0_12, %c0_13] : memref<4x128x512xf32, #tpu.memory_space<vmem>>, vector<4x128x128xf32>
    %17 = vector.shape_cast %15 : vector<1x128xf32> to vector<1x1x128xf32>
    %18 = vector.broadcast %17 : vector<1x1x128xf32> to vector<4x128x128xf32>
    %19 = arith.mulf %16, %18 : vector<4x128x128xf32>
    %c0_14 = arith.constant 0 : index
    %c0_15 = arith.constant 0 : index
    %c0_16 = arith.constant 0 : index
    %20 = vector.load %arg3[%c0_14, %c0_15, %c0_16] : memref<4x128x512xf32, #tpu.memory_space<vmem>>, vector<4x128x128xf32>
    tpu.vector_store %arg3[%c0_14, %c0_15, %c0_16], %19 {strides = array<i32>} : memref<4x128x512xf32, #tpu.memory_space<vmem>>, vector<4x128x128xf32>,
    %21 = vector.extract_strided_slice %14 {offsets = [1, 0], sizes = [1, 128], strides = [1, 1]} : vector<4x128xf32> to vector<1x128xf32>
    %c0_17 = arith.constant 0 : index
    %c0_18 = arith.constant 0 : index
    %c128 = arith.constant 128 : index
    %22 = vector.load %arg0[%c0_17, %c0_18, %c128] : memref<4x128x512xf32, #tpu.memory_space<vmem>>, vector<4x128x128xf32>
    %23 = vector.shape_cast %21 : vector<1x128xf32> to vector<1x1x128xf32>
    %24 = vector.broadcast %23 : vector<1x1x128xf32> to vector<4x128x128xf32>
    %25 = arith.mulf %22, %24 : vector<4x128x128xf32>
    %c0_19 = arith.constant 0 : index
    %c0_20 = arith.constant 0 : index
    %c128_21 = arith.constant 128 : index
    %26 = vector.load %arg3[%c0_19, %c0_20, %c128_21] : memref<4x128x512xf32, #tpu.memory_space<vmem>>, vector<4x128x128xf32>
    tpu.vector_store %arg3[%c0_19, %c0_20, %c128_21], %25 {strides = array<i32>} : memref<4x128x512xf32, #tpu.memory_space<vmem>>, vector<4x128x128xf32>,
    %27 = vector.extract_strided_slice %14 {offsets = [2, 0], sizes = [1, 128], strides = [1, 1]} : vector<4x128xf32> to vector<1x128xf32>
    %c0_22 = arith.constant 0 : index
    %c0_23 = arith.constant 0 : index
    %c256 = arith.constant 256 : index
    %28 = vector.load %arg0[%c0_22, %c0_23, %c256] : memref<4x128x512xf32, #tpu.memory_space<vmem>>, vector<4x128x128xf32>
    %29 = vector.shape_cast %27 : vector<1x128xf32> to vector<1x1x128xf32>
    %30 = vector.broadcast %29 : vector<1x1x128xf32> to vector<4x128x128xf32>
    %31 = arith.mulf %28, %30 : vector<4x128x128xf32>
    %c0_24 = arith.constant 0 : index
    %c0_25 = arith.constant 0 : index
    %c256_26 = arith.constant 256 : index
    %32 = vector.load %arg3[%c0_24, %c0_25, %c256_26] : memref<4x128x512xf32, #tpu.memory_space<vmem>>, vector<4x128x128xf32>
    tpu.vector_store %arg3[%c0_24, %c0_25, %c256_26], %31 {strides = array<i32>} : memref<4x128x512xf32, #tpu.memory_space<vmem>>, vector<4x128x128xf32>,
    %33 = vector.extract_strided_slice %14 {offsets = [3, 0], sizes = [1, 128], strides = [1, 1]} : vector<4x128xf32> to vector<1x128xf32>
    %c0_27 = arith.constant 0 : index
    %c0_28 = arith.constant 0 : index
    %c384 = arith.constant 384 : index
    %34 = vector.load %arg0[%c0_27, %c0_28, %c384] : memref<4x128x512xf32, #tpu.memory_space<vmem>>, vector<4x128x128xf32>
    %35 = vector.shape_cast %33 : vector<1x128xf32> to vector<1x1x128xf32>
    %36 = vector.broadcast %35 : vector<1x1x128xf32> to vector<4x128x128xf32>
    %37 = arith.mulf %34, %36 : vector<4x128x128xf32>
    %c0_29 = arith.constant 0 : index
    %c0_30 = arith.constant 0 : index
    %c384_31 = arith.constant 384 : index
    %38 = vector.load %arg3[%c0_29, %c0_30, %c384_31] : memref<4x128x512xf32, #tpu.memory_space<vmem>>, vector<4x128x128xf32>
    tpu.vector_store %arg3[%c0_29, %c0_30, %c384_31], %37 {strides = array<i32>} : memref<4x128x512xf32, #tpu.memory_space<vmem>>, vector<4x128x128xf32>,
    return
  }
}

</mosaic_0001>

<bundles_post_ra>
// kernel: se_block.1
= control target key start
LH: loop header
LB: loop body
LE: loop exit
PB: predicated region body
PF: predicated region fallthrough
CT: control target
= control target key end

     0   :  { %vm2173_vm0 = vmmov 0   ;;  %vm1161_vm1 = vcmask 64512   ;;  %vm746_vm2 = vcmask 130112   ;;  %vm753_vm3 = vcmask 195712   ;;  %s5233_s0 = inlined_call_operand.vmem [shape: f32[4,128,512], index: 0, kind: input, shape index: {}]   ;;  %s5234_s1 = inlined_call_operand.vmem [shape: f32[8,128], index: 1, kind: input, shape index: {}]   ;;  %s5235_s2 = inlined_call_operand.vmem [shape: f32[128,8], index: 2, kind: input, shape index: {}]   ;;  %s5236_s3 = inlined_call_operand.vmem [shape: f32[4,128,512], index: 3, kind: output, shape index: {}]  }
   0x1   :  { %v78_v0 = vld [vmem:[%s5233_s0 + $0x200] sm:$0xff]  ;;  %v79_v1 = vld [vmem:[%s5233_s0 + $0x208] sm:$0xff]  ;;  %v80_v2 = vld [vmem:[%s5233_s0 + $0x210] sm:$0xff]  ;;  %vm760_vm4 = vcmask 261312   ;;  %vm767_vm5 = vcmask 326912   ;;  %vm774_vm6 = vcmask 392512  }
   0x2   :  { %v350_v3 = vadd.f32 %v79_v1, %v78_v0  ;;  %v14_v4 = vld [vmem:[%s5233_s0] sm:$0xff]  ;;  %v15_v5 = vld [vmem:[%s5233_s0 + $0x8] sm:$0xff]  ;;  %v81_v6 = vld [vmem:[%s5233_s0 + $0x218] sm:$0xff]  ;;  %vm781_vm7 = vcmask 458112   ;;  %vm788_vm8 = vcmask 523712   ;;  %vm795_vm9 = vcmask 589312  }
   0x3   :  { %v16_v7 = vld [vmem:[%s5233_s0 + $0x10] sm:$0xff]  ;;  %v270_v8 = vadd.f32 %v15_v5, %v14_v4  ;;  %v82_v9 = vld [vmem:[%s5233_s0 + $0x220] sm:$0xff]  ;;  %v17_v11 = vld [vmem:[%s5233_s0 + $0x18] sm:$0xff]  ;;  %vm802_vm10 = vcmask 654912   ;;  %vm809_vm11 = vcmask 720512   ;;  %vm816_vm12 = vcmask 786112  }
   0x4   :  { %v351_v10 = vadd.f32 %v350_v3, %v80_v2  ;;  %v83_v12 = vld [vmem:[%s5233_s0 + $0x228] sm:$0xff]  ;;  %v84_v13 = vld [vmem:[%s5233_s0 + $0x230] sm:$0xff]  ;;  %v18_v16 = vld [vmem:[%s5233_s0 + $0x20] sm:$0xff]  ;;  %vm823_vm13 = vcmask 851712   ;;  %vm830_vm14 = vcmask 917312   ;;  %vm837_vm15 = vcmask 982912  }
   0x5   :  { %v271_v14 = vadd.f32 %v270_v8, %v16_v7  ;;  %v355_v15 = vadd.f32 %v83_v12, %v82_v9  ;;  %v19_v17 = vld [vmem:[%s5233_s0 + $0x28] sm:$0xff]  ;;  %v20_v18 = vld [vmem:[%s5233_s0 + $0x30] sm:$0xff]  ;;  %v85_v20 = vld [vmem:[%s5233_s0 + $0x238] sm:$0xff] }
   0x6   :  { %v352_v19 = vadd.f32 %v351_v10, %v81_v6  ;;  %v275_v21 = vadd.f32 %v19_v17, %v18_v16  ;;  %v86_v22 = vld [vmem:[%s5233_s0 + $0x240] sm:$0xff]  ;;  %v87_v23 = vld [vmem:[%s5233_s0 + $0x248] sm:$0xff]  ;;  %v21_v26 = vld [vmem:[%s5233_s0 + $0x38] sm:$0xff] }
   0x7   :  { %v272_v24 = vadd.f32 %v271_v14, %v17_v11  ;;  %v356_v25 = vadd.f32 %v355_v15, %v84_v13  ;;  %v88_v27 = vld [vmem:[%s5233_s0 + $0x250] sm:$0xff]  ;;  %v360_v28 = vadd.f32 %v87_v23, %v86_v22  ;;  %v22_v29 = vld [vmem:[%s5233_s0 + $0x40] sm:$0xff]  ;;  %v89_v31 = vld [vmem:[%s5233_s0 + $0x258] sm:$0xff] }
   0x8   :  { %353 = vadd.xlane.f32.xlu1 %v352_v19  ;;  %v276_v30 = vadd.f32 %v275_v21, %v20_v18  ;;  %v23_v32 = vld [vmem:[%s5233_s0 + $0x48] sm:$0xff]  ;;  %v24_v33 = vld [vmem:[%s5233_s0 + $0x50] sm:$0xff]  ;;  %v146_v37 = vld [vmem:[%s5233_s0 + $0x420] sm:$0xff] }
   0x9   :  { %273 = vadd.xlane.f32.xlu0 %v272_v24  ;;  %v357_v34 = vadd.f32 %v356_v25, %v85_v20  ;;  %v361_v35 = vadd.f32 %v360_v28, %v88_v27  ;;  %v280_v36 = vadd.f32 %v23_v32, %v22_v29  ;;  %v147_v38 = vld [vmem:[%s5233_s0 + $0x428] sm:$0xff]  ;;  %v148_v39 = vld [vmem:[%s5233_s0 + $0x430] sm:$0xff]  ;;  %v25_v41 = vld [vmem:[%s5233_s0 + $0x58] sm:$0xff] }
   0xa   :  { %v277_v40 = vadd.f32 %v276_v30, %v21_v26  ;;  %v435_v42 = vadd.f32 %v147_v38, %v146_v37  ;;  %v142_v43 = vld [vmem:[%s5233_s0 + $0x400] sm:$0xff]  ;;  %v143_v44 = vld [vmem:[%s5233_s0 + $0x408] sm:$0xff]  ;;  %v144_v46 = vld [vmem:[%s5233_s0 + $0x410] sm:$0xff] }
   0xb   :  { %v281_v45 = vadd.f32 %v280_v36, %v24_v33  ;;  %v430_v47 = vadd.f32 %v143_v44, %v142_v43  ;;  %v90_v48 = vld [vmem:[%s5233_s0 + $0x260] sm:$0xff]  ;;  %v362_v49 = vadd.f32 %v361_v35, %v89_v31  ;;  %v149_v50 = vld [vmem:[%s5233_s0 + $0x438] sm:$0xff]  ;;  %v91_v53 = vld [vmem:[%s5233_s0 + $0x268] sm:$0xff] }
   0xc   :  { %358 = vadd.xlane.f32.xlu1 %v357_v34  ;;  %v436_v51 = vadd.f32 %v435_v42, %v148_v39  ;;  %v145_v52 = vld [vmem:[%s5233_s0 + $0x418] sm:$0xff]  ;;  %v92_v56 = vld [vmem:[%s5233_s0 + $0x270] sm:$0xff]  ;;  %v365_v57 = vadd.f32 %v91_v53, %v90_v48  ;;  %v26_v58 = vld [vmem:[%s5233_s0 + $0x60] sm:$0xff] }
   0xd   :  { %278 = vadd.xlane.f32.xlu0 %v277_v40  ;;  %v282_v54 = vadd.f32 %v281_v45, %v25_v41  ;;  %v431_v55 = vadd.f32 %v430_v47, %v144_v46  ;;  %v27_v59 = vld [vmem:[%s5233_s0 + $0x68] sm:$0xff]  ;;  %v28_v60 = vld [vmem:[%s5233_s0 + $0x70] sm:$0xff]  ;;  %v206_v62 = vld [vmem:[%s5233_s0 + $0x600] sm:$0xff] }
   0xe   :  { %v285_v61 = vadd.f32 %v27_v59, %v26_v58  ;;  %v207_v63 = vld [vmem:[%s5233_s0 + $0x608] sm:$0xff]  ;;  %v150_v0 = vld [vmem:[%s5233_s0 + $0x440] sm:$0xff]  ;;  %v437_v1 = vadd.f32 %v436_v51, %v149_v50  ;;  %v93_v2 = vld [vmem:[%s5233_s0 + $0x278] sm:$0xff]  ;;  %v366_v3 = vadd.f32 %v365_v57, %v92_v56 }
   0xf   :  { %v29_v4 = vld [vmem:[%s5233_s0 + $0x78] sm:$0xff]  ;;  %v510_v5 = vadd.f32 %v207_v63, %v206_v62  ;;  %v151_v6 = vld [vmem:[%s5233_s0 + $0x448] sm:$0xff]  ;;  %v432_v7 = vadd.f32 %v431_v55, %v145_v52  ;;  %v208_v9 = vld [vmem:[%s5233_s0 + $0x610] sm:$0xff] }
  0x10   :  { %363 = vadd.xlane.f32.xlu1 %v362_v49  ;;  %v286_v8 = vadd.f32 %v285_v61, %v28_v60  ;;  %v440_v10 = vadd.f32 %v151_v6, %v150_v0  ;;  %v30_v11 = vld [vmem:[%s5233_s0 + $0x80] sm:$0xff]  ;;  %v31_v12 = vld [vmem:[%s5233_s0 + $0x88] sm:$0xff]  ;;  %v152_v13 = vld [vmem:[%s5233_s0 + $0x450] sm:$0xff]  ;;  %v367_v16 = vadd.f32 %v366_v3, %v93_v2 }
  0x11   :  { %283 = vadd.xlane.f32.xlu0 %v282_v54  ;;  %v210_v14 = vld [vmem:[%s5233_s0 + $0x620] sm:$0xff]  ;;  %v211_v15 = vld [vmem:[%s5233_s0 + $0x628] sm:$0xff]  ;;  %v209_v17 = vld [vmem:[%s5233_s0 + $0x618] sm:$0xff]  ;;  %v511_v18 = vadd.f32 %v510_v5, %v208_v9  ;;  %v290_v20 = vadd.f32 %v31_v12, %v30_v11 }
  0x12   :  { %v153_v19 = vld [vmem:[%s5233_s0 + $0x458] sm:$0xff]  ;;  %v287_v21 = vadd.f32 %v286_v8, %v29_v4  ;;  %v441_v22 = vadd.f32 %v440_v10, %v152_v13  ;;  %v32_v23 = vld [vmem:[%s5233_s0 + $0x90] sm:$0xff]  ;;  %v515_v24 = vadd.f32 %v211_v15, %v210_v14  ;;  %v154_v25 = vld [vmem:[%s5233_s0 + $0x460] sm:$0xff] }
  0x13   :  { %v155_v26 = vld [vmem:[%s5233_s0 + $0x468] sm:$0xff]  ;;  %v212_v27 = vld [vmem:[%s5233_s0 + $0x630] sm:$0xff]  ;;  %v94_v28 = vld [vmem:[%s5233_s0 + $0x280] sm:$0xff]  ;;  %v512_v30 = vadd.f32 %v511_v18, %v209_v17  ;;  %v291_v32 = vadd.f32 %v290_v20, %v32_v23 }
  0x14   :  { %438 = vadd.xlane.f32.xlu1 %v437_v1  ;;  %v95_v29 = vld [vmem:[%s5233_s0 + $0x288] sm:$0xff]  ;;  %v33_v31 = vld [vmem:[%s5233_s0 + $0x98] sm:$0xff]  ;;  %v445_v34 = vadd.f32 %v155_v26, %v154_v25  ;;  %v442_v35 = vadd.f32 %v441_v22, %v153_v19  ;;  %v516_v36 = vadd.f32 %v515_v24, %v212_v27  ;;  %v156_v37 = vld [vmem:[%s5233_s0 + $0x470] sm:$0xff] }
  0x15   :  { %433 = vadd.xlane.f32.xlu0 %v432_v7  ;;  %v213_v33 = vld [vmem:[%s5233_s0 + $0x638] sm:$0xff]  ;;  %v370_v38 = vadd.f32 %v95_v29, %v94_v28  ;;  %v34_v39 = vld [vmem:[%s5233_s0 + $0xa0] sm:$0xff]  ;;  %v35_v40 = vld [vmem:[%s5233_s0 + $0xa8] sm:$0xff]  ;;  %v292_v44 = vadd.f32 %v291_v32, %v33_v31 }
  0x16   :  { %v96_v41 = vld [vmem:[%s5233_s0 + $0x290] sm:$0xff]  ;;  %v214_v42 = vld [vmem:[%s5233_s0 + $0x640] sm:$0xff]  ;;  %v215_v43 = vld [vmem:[%s5233_s0 + $0x648] sm:$0xff]  ;;  %v446_v46 = vadd.f32 %v445_v34, %v156_v37  ;;  %v295_v48 = vadd.f32 %v35_v40, %v34_v39  ;;  %v517_v49 = vadd.f32 %v516_v36, %v213_v33 }
  0x17   :  { %v157_v45 = vld [vmem:[%s5233_s0 + $0x478] sm:$0xff]  ;;  %v371_v50 = vadd.f32 %v370_v38, %v96_v41  ;;  %v36_v51 = vld [vmem:[%s5233_s0 + $0xb0] sm:$0xff]  ;;  %v520_v52 = vadd.f32 %v215_v43, %v214_v42  ;;  %v158_v53 = vld [vmem:[%s5233_s0 + $0x480] sm:$0xff] }
  0x18   :  { %368 = vadd.xlane.f32.xlu1 %v367_v16  ;;  %v97_v47 = vld [vmem:[%s5233_s0 + $0x298] sm:$0xff]  ;;  %v159_v54 = vld [vmem:[%s5233_s0 + $0x488] sm:$0xff]  ;;  %v216_v55 = vld [vmem:[%s5233_s0 + $0x650] sm:$0xff]  ;;  %v447_v58 = vadd.f32 %v446_v46, %v157_v45  ;;  %v296_v60 = vadd.f32 %v295_v48, %v36_v51 }
  0x19   :  { %288 = vadd.xlane.f32.xlu0 %v287_v21  ;;  %v98_v56 = vld [vmem:[%s5233_s0 + $0x2a0] sm:$0xff]  ;;  %v99_v57 = vld [vmem:[%s5233_s0 + $0x2a8] sm:$0xff]  ;;  %v37_v59 = vld [vmem:[%s5233_s0 + $0xb8] sm:$0xff]  ;;  %v450_v62 = vadd.f32 %v159_v54, %v158_v53  ;;  %v372_v63 = vadd.f32 %v371_v50, %v97_v47  ;;  %v521_v0 = vadd.f32 %v520_v52, %v216_v55 }
  0x1a   :  { %v217_v61 = vld [vmem:[%s5233_s0 + $0x658] sm:$0xff]  ;;  %v160_v1 = vld [vmem:[%s5233_s0 + $0x490] sm:$0xff]  ;;  %v375_v2 = vadd.f32 %v99_v57, %v98_v56  ;;  %v38_v3 = vld [vmem:[%s5233_s0 + $0xc0] sm:$0xff]  ;;  %v297_v8 = vadd.f32 %v296_v60, %v37_v59 }
  0x1b   :  { %v39_v4 = vld [vmem:[%s5233_s0 + $0xc8] sm:$0xff]  ;;  %v100_v5 = vld [vmem:[%s5233_s0 + $0x2b0] sm:$0xff]  ;;  %v218_v6 = vld [vmem:[%s5233_s0 + $0x660] sm:$0xff]  ;;  %v451_v10 = vadd.f32 %v450_v62, %v160_v1  ;;  %v522_v13 = vadd.f32 %v521_v0, %v217_v61 }
  0x1c   :  { %513 = vadd.xlane.f32.xlu1 %v512_v30  ;;  %v219_v7 = vld [vmem:[%s5233_s0 + $0x668] sm:$0xff]  ;;  %v161_v9 = vld [vmem:[%s5233_s0 + $0x498] sm:$0xff]  ;;  %v300_v12 = vadd.f32 %v39_v4, %v38_v3  ;;  %v376_v14 = vadd.f32 %v375_v2, %v100_v5  ;;  %v40_v15 = vld [vmem:[%s5233_s0 + $0xd0] sm:$0xff] }
  0x1d   :  { %443 = vadd.xlane.f32.xlu0 %v442_v35  ;;  %v101_v11 = vld [vmem:[%s5233_s0 + $0x2b8] sm:$0xff]  ;;  %v525_v16 = vadd.f32 %v219_v7, %v218_v6  ;;  %v162_v17 = vld [vmem:[%s5233_s0 + $0x4a0] sm:$0xff]  ;;  %v163_v18 = vld [vmem:[%s5233_s0 + $0x4a8] sm:$0xff]  ;;  %v452_v22 = vadd.f32 %v451_v10, %v161_v9 }
  0x1e   :  { %v220_v19 = vld [vmem:[%s5233_s0 + $0x670] sm:$0xff]  ;;  %v102_v20 = vld [vmem:[%s5233_s0 + $0x2c0] sm:$0xff]  ;;  %v103_v21 = vld [vmem:[%s5233_s0 + $0x2c8] sm:$0xff]  ;;  %v301_v24 = vadd.f32 %v300_v12, %v40_v15  ;;  %v455_v26 = vadd.f32 %v163_v18, %v162_v17  ;;  %v377_v27 = vadd.f32 %v376_v14, %v101_v11 }
  0x1f   :  { %v41_v23 = vld [vmem:[%s5233_s0 + $0xd8] sm:$0xff]  ;;  %v526_v28 = vadd.f32 %v525_v16, %v220_v19  ;;  %v164_v29 = vld [vmem:[%s5233_s0 + $0x4b0] sm:$0xff]  ;;  %v380_v30 = vadd.f32 %v103_v21, %v102_v20  ;;  %v42_v31 = vld [vmem:[%s5233_s0 + $0xe0] sm:$0xff] }
  0x20   :  { %293 = vadd.xlane.f32.xlu1 %v292_v44  ;;  %v221_v25 = vld [vmem:[%s5233_s0 + $0x678] sm:$0xff]  ;;  %v43_v32 = vld [vmem:[%s5233_s0 + $0xe8] sm:$0xff]  ;;  %v104_v33 = vld [vmem:[%s5233_s0 + $0x2d0] sm:$0xff]  ;;  %v302_v36 = vadd.f32 %v301_v24, %v41_v23  ;;  %v456_v38 = vadd.f32 %v455_v26, %v164_v29 }
  0x21   :  { %518 = vadd.xlane.f32.xlu0 %v517_v49  ;;  %v222_v34 = vld [vmem:[%s5233_s0 + $0x680] sm:$0xff]  ;;  %v223_v35 = vld [vmem:[%s5233_s0 + $0x688] sm:$0xff]  ;;  %v165_v37 = vld [vmem:[%s5233_s0 + $0x4b8] sm:$0xff]  ;;  %v305_v40 = vadd.f32 %v43_v32, %v42_v31  ;;  %v527_v41 = vadd.f32 %v526_v28, %v221_v25  ;;  %v381_v42 = vadd.f32 %v380_v30, %v104_v33 }
  0x22   :  { %v105_v39 = vld [vmem:[%s5233_s0 + $0x2d8] sm:$0xff]  ;;  %v44_v43 = vld [vmem:[%s5233_s0 + $0xf0] sm:$0xff]  ;;  %v530_v44 = vadd.f32 %v223_v35, %v222_v34  ;;  %v166_v45 = vld [vmem:[%s5233_s0 + $0x4c0] sm:$0xff]  ;;  %v457_v50 = vadd.f32 %v456_v38, %v165_v37 }
  0x23   :  { %v167_v46 = vld [vmem:[%s5233_s0 + $0x4c8] sm:$0xff]  ;;  %v224_v47 = vld [vmem:[%s5233_s0 + $0x690] sm:$0xff]  ;;  %v106_v48 = vld [vmem:[%s5233_s0 + $0x2e0] sm:$0xff]  ;;  %v306_v52 = vadd.f32 %v305_v40, %v44_v43  ;;  %v382_v55 = vadd.f32 %v381_v42, %v105_v39 }
  0x24   :  { %448 = vadd.xlane.f32.xlu1 %v447_v58  ;;  %v107_v49 = vld [vmem:[%s5233_s0 + $0x2e8] sm:$0xff]  ;;  %v45_v51 = vld [vmem:[%s5233_s0 + $0xf8] sm:$0xff]  ;;  %v460_v54 = vadd.f32 %v167_v46, %v166_v45  ;;  %v531_v56 = vadd.f32 %v530_v44, %v224_v47  ;;  %v168_v57 = vld [vmem:[%s5233_s0 + $0x4d0] sm:$0xff] }
  0x25   :  { %373 = vadd.xlane.f32.xlu0 %v372_v63  ;;  %v225_v53 = vld [vmem:[%s5233_s0 + $0x698] sm:$0xff]  ;;  %v385_v58 = vadd.f32 %v107_v49, %v106_v48  ;;  %v46_v59 = vld [vmem:[%s5233_s0 + $0x100] sm:$0xff]  ;;  %v47_v60 = vld [vmem:[%s5233_s0 + $0x108] sm:$0xff]  ;;  %v307_v0 = vadd.f32 %v306_v52, %v45_v51 }
  0x26   :  { %v108_v61 = vld [vmem:[%s5233_s0 + $0x2f0] sm:$0xff]  ;;  %v226_v62 = vld [vmem:[%s5233_s0 + $0x6a0] sm:$0xff]  ;;  %v227_v63 = vld [vmem:[%s5233_s0 + $0x6a8] sm:$0xff]  ;;  %v461_v2 = vadd.f32 %v460_v54, %v168_v57  ;;  %v310_v4 = vadd.f32 %v47_v60, %v46_v59  ;;  %v532_v5 = vadd.f32 %v531_v56, %v225_v53 }
  0x27   :  { %v169_v1 = vld [vmem:[%s5233_s0 + $0x4d8] sm:$0xff]  ;;  %v386_v6 = vadd.f32 %v385_v58, %v108_v61  ;;  %v48_v7 = vld [vmem:[%s5233_s0 + $0x110] sm:$0xff]  ;;  %v170_v9 = vld [vmem:[%s5233_s0 + $0x4e0] sm:$0xff] }
  0x28   :  { %298 = vadd.xlane.f32.xlu1 %v297_v8  ;;  %v109_v3 = vld [vmem:[%s5233_s0 + $0x2f8] sm:$0xff]  ;;  %v535_v8 = vadd.f32 %v227_v63, %v226_v62  ;;  %v171_v10 = vld [vmem:[%s5233_s0 + $0x4e8] sm:$0xff]  ;;  %v228_v11 = vld [vmem:[%s5233_s0 + $0x6b0] sm:$0xff]  ;;  %v462_v14 = vadd.f32 %v461_v2, %v169_v1  ;;  %v311_v16 = vadd.f32 %v310_v4, %v48_v7 }
  0x29   :  { %523 = vadd.xlane.f32.xlu0 %v522_v13  ;;  %v110_v12 = vld [vmem:[%s5233_s0 + $0x300] sm:$0xff]  ;;  %v111_v13 = vld [vmem:[%s5233_s0 + $0x308] sm:$0xff]  ;;  %v49_v15 = vld [vmem:[%s5233_s0 + $0x118] sm:$0xff]  ;;  %v465_v18 = vadd.f32 %v171_v10, %v170_v9  ;;  %v387_v19 = vadd.f32 %v386_v6, %v109_v3 }
  0x2a   :  { %v229_v17 = vld [vmem:[%s5233_s0 + $0x6b8] sm:$0xff]  ;;  %v536_v20 = vadd.f32 %v535_v8, %v228_v11  ;;  %v172_v21 = vld [vmem:[%s5233_s0 + $0x4f0] sm:$0xff]  ;;  %v50_v23 = vld [vmem:[%s5233_s0 + $0x120] sm:$0xff]  ;;  %v312_v28 = vadd.f32 %v311_v16, %v49_v15 }
  0x2b   :  { %v51_v24 = vld [vmem:[%s5233_s0 + $0x128] sm:$0xff]  ;;  %v112_v25 = vld [vmem:[%s5233_s0 + $0x310] sm:$0xff]  ;;  %v230_v26 = vld [vmem:[%s5233_s0 + $0x6c0] sm:$0xff]  ;;  %v466_v30 = vadd.f32 %v465_v18, %v172_v21 }
  0x2c   :  { %453 = vadd.xlane.f32.xlu1 %v452_v22  ;;  %v390_v22 = vadd.f32 %v111_v13, %v110_v12  ;;  %v173_v29 = vld [vmem:[%s5233_s0 + $0x4f8] sm:$0xff]  ;;  %v315_v32 = vadd.f32 %v51_v24, %v50_v23  ;;  %v537_v33 = vadd.f32 %v536_v20, %v229_v17  ;;  %v52_v35 = vld [vmem:[%s5233_s0 + $0x130] sm:$0xff]  ;;  %v174_v37 = vld [vmem:[%s5233_s0 + $0x500] sm:$0xff] }
  0x2d   :  { %378 = vadd.xlane.f32.xlu0 %v377_v27  ;;  %v231_v27 = vld [vmem:[%s5233_s0 + $0x6c8] sm:$0xff]  ;;  %v113_v31 = vld [vmem:[%s5233_s0 + $0x318] sm:$0xff]  ;;  %v232_v39 = vld [vmem:[%s5233_s0 + $0x6d0] sm:$0xff]  ;;  %v467_v42 = vadd.f32 %v466_v30, %v173_v29 }
  0x2e   :  { %v391_v34 = vadd.f32 %v390_v22, %v112_v25  ;;  %v175_v38 = vld [vmem:[%s5233_s0 + $0x508] sm:$0xff]  ;;  %v114_v40 = vld [vmem:[%s5233_s0 + $0x320] sm:$0xff]  ;;  %v53_v43 = vld [vmem:[%s5233_s0 + $0x138] sm:$0xff]  ;;  %v316_v44 = vadd.f32 %v315_v32, %v52_v35 }
  0x2f   :  { %v233_v45 = vld [vmem:[%s5233_s0 + $0x6d8] sm:$0xff]  ;;  %v470_v46 = vadd.f32 %v175_v38, %v174_v37  ;;  %v176_v49 = vld [vmem:[%s5233_s0 + $0x510] sm:$0xff]  ;;  %v54_v51 = vld [vmem:[%s5233_s0 + $0x140] sm:$0xff] }
  0x30   :  { %303 = vadd.xlane.f32.xlu1 %v302_v36  ;;  %v540_v36 = vadd.f32 %v231_v27, %v230_v26  ;;  %v392_v47 = vadd.f32 %v391_v34, %v113_v31  ;;  %v55_v52 = vld [vmem:[%s5233_s0 + $0x148] sm:$0xff]  ;;  %v116_v53 = vld [vmem:[%s5233_s0 + $0x330] sm:$0xff]  ;;  %v234_v54 = vld [vmem:[%s5233_s0 + $0x6e0] sm:$0xff]  ;;  %v317_v56 = vadd.f32 %v316_v44, %v53_v43 }
  0x31   :  { %528 = vadd.xlane.f32.xlu0 %v527_v41  ;;  %v115_v41 = vld [vmem:[%s5233_s0 + $0x328] sm:$0xff]  ;;  %v177_v57 = vld [vmem:[%s5233_s0 + $0x518] sm:$0xff]  ;;  %v471_v58 = vadd.f32 %v470_v46, %v176_v49  ;;  %v320_v60 = vadd.f32 %v55_v52, %v54_v51  ;;  %v56_v63 = vld [vmem:[%s5233_s0 + $0x150] sm:$0xff] }
  0x32   :  { %v541_v48 = vadd.f32 %v540_v36, %v232_v39  ;;  %v117_v59 = vld [vmem:[%s5233_s0 + $0x338] sm:$0xff]  ;;  %v178_v1 = vld [vmem:[%s5233_s0 + $0x520] sm:$0xff]  ;;  %v179_v2 = vld [vmem:[%s5233_s0 + $0x528] sm:$0xff] }
  0x33   :  { %v236_v3 = vld [vmem:[%s5233_s0 + $0x6f0] sm:$0xff]  ;;  %v118_v4 = vld [vmem:[%s5233_s0 + $0x340] sm:$0xff]  ;;  %v472_v6 = vadd.f32 %v471_v58, %v177_v57  ;;  %v57_v7 = vld [vmem:[%s5233_s0 + $0x158] sm:$0xff]  ;;  %v321_v8 = vadd.f32 %v320_v60, %v56_v63  ;;  %v475_v10 = vadd.f32 %v179_v2, %v178_v1 }
  0x34   :  { %458 = vadd.xlane.f32.xlu1 %v457_v50  ;;  %v395_v50 = vadd.f32 %v115_v41, %v114_v40  ;;  %v542_v61 = vadd.f32 %v541_v48, %v233_v45  ;;  %v237_v9 = vld [vmem:[%s5233_s0 + $0x6f8] sm:$0xff]  ;;  %v180_v13 = vld [vmem:[%s5233_s0 + $0x530] sm:$0xff]  ;;  %v58_v15 = vld [vmem:[%s5233_s0 + $0x160] sm:$0xff] }
  0x35   :  { %383 = vadd.xlane.f32.xlu0 %v382_v55  ;;  %v235_v55 = vld [vmem:[%s5233_s0 + $0x6e8] sm:$0xff]  ;;  %v120_v17 = vld [vmem:[%s5233_s0 + $0x350] sm:$0xff]  ;;  %v238_v18 = vld [vmem:[%s5233_s0 + $0x700] sm:$0xff]  ;;  %v322_v20 = vadd.f32 %v321_v8, %v57_v7  ;;  %v476_v22 = vadd.f32 %v475_v10, %v180_v13 }
  0x36   :  { %v396_v62 = vadd.f32 %v395_v50, %v116_v53  ;;  %v59_v16 = vld [vmem:[%s5233_s0 + $0x168] sm:$0xff]  ;;  %v181_v21 = vld [vmem:[%s5233_s0 + $0x538] sm:$0xff]  ;;  %v60_v27 = vld [vmem:[%s5233_s0 + $0x170] sm:$0xff] }
  0x37   :  { %v121_v23 = vld [vmem:[%s5233_s0 + $0x358] sm:$0xff]  ;;  %v325_v24 = vadd.f32 %v59_v16, %v58_v15  ;;  %v182_v29 = vld [vmem:[%s5233_s0 + $0x540] sm:$0xff]  ;;  %v183_v30 = vld [vmem:[%s5233_s0 + $0x548] sm:$0xff]  ;;  %v477_v34 = vadd.f32 %v476_v22, %v181_v21 }
  0x38   :  { %308 = vadd.xlane.f32.xlu1 %v307_v0  ;;  %v545_v0 = vadd.f32 %v235_v55, %v234_v54  ;;  %v397_v11 = vadd.f32 %v396_v62, %v117_v59  ;;  %v240_v31 = vld [vmem:[%s5233_s0 + $0x710] sm:$0xff]  ;;  %v122_v32 = vld [vmem:[%s5233_s0 + $0x360] sm:$0xff]  ;;  %v61_v35 = vld [vmem:[%s5233_s0 + $0x178] sm:$0xff]  ;;  %v480_v38 = vadd.f32 %v183_v30, %v182_v29 }
  0x39   :  { %533 = vadd.xlane.f32.xlu0 %v532_v5  ;;  %v119_v5 = vld [vmem:[%s5233_s0 + $0x348] sm:$0xff]  ;;  %v326_v36 = vadd.f32 %v325_v24, %v60_v27  ;;  %v241_v37 = vld [vmem:[%s5233_s0 + $0x718] sm:$0xff]  ;;  %v184_v41 = vld [vmem:[%s5233_s0 + $0x550] sm:$0xff] }
  0x3a   :  { %v546_v12 = vadd.f32 %v545_v0, %v236_v3  ;;  %v62_v43 = vld [vmem:[%s5233_s0 + $0x180] sm:$0xff]  ;;  %v63_v44 = vld [vmem:[%s5233_s0 + $0x188] sm:$0xff]  ;;  %v124_v45 = vld [vmem:[%s5233_s0 + $0x370] sm:$0xff]  ;;  %v481_v50 = vadd.f32 %v480_v38, %v184_v41 }
  0x3b   :  { %v242_v46 = vld [vmem:[%s5233_s0 + $0x720] sm:$0xff]  ;;  %v327_v48 = vadd.f32 %v326_v36, %v61_v35  ;;  %v185_v49 = vld [vmem:[%s5233_s0 + $0x558] sm:$0xff]  ;;  %v330_v52 = vadd.f32 %v63_v44, %v62_v43  ;;  %v64_v55 = vld [vmem:[%s5233_s0 + $0x190] sm:$0xff] }
  0x3c   :  { %463 = vadd.xlane.f32.xlu1 %v462_v14  ;;  %v400_v14 = vadd.f32 %v119_v5, %v118_v4  ;;  %v547_v25 = vadd.f32 %v546_v12, %v237_v9  ;;  %v125_v51 = vld [vmem:[%s5233_s0 + $0x378] sm:$0xff]  ;;  %v186_v57 = vld [vmem:[%s5233_s0 + $0x560] sm:$0xff]  ;;  %v187_v58 = vld [vmem:[%s5233_s0 + $0x568] sm:$0xff]  ;;  %v482_v62 = vadd.f32 %v481_v50, %v185_v49 }
  0x3d   :  { %388 = vadd.xlane.f32.xlu0 %v387_v19  ;;  %v239_v19 = vld [vmem:[%s5233_s0 + $0x708] sm:$0xff]  ;;  %v244_v59 = vld [vmem:[%s5233_s0 + $0x730] sm:$0xff]  ;;  %v126_v60 = vld [vmem:[%s5233_s0 + $0x380] sm:$0xff]  ;;  %v331_v0 = vadd.f32 %v330_v52, %v64_v55  ;;  %v485_v2 = vadd.f32 %v187_v58, %v186_v57 }
  0x3e   :  { %v401_v26 = vadd.f32 %v400_v14, %v120_v17  ;;  %v65_v63 = vld [vmem:[%s5233_s0 + $0x198] sm:$0xff]  ;;  %v188_v5 = vld [vmem:[%s5233_s0 + $0x570] sm:$0xff]  ;;  %v66_v7 = vld [vmem:[%s5233_s0 + $0x1a0] sm:$0xff] }
  0x3f   :  { %v245_v1 = vld [vmem:[%s5233_s0 + $0x738] sm:$0xff]  ;;  %v67_v8 = vld [vmem:[%s5233_s0 + $0x1a8] sm:$0xff]  ;;  %v128_v9 = vld [vmem:[%s5233_s0 + $0x390] sm:$0xff]  ;;  %v332_v12 = vadd.f32 %v331_v0, %v65_v63  ;;  %v486_v14 = vadd.f32 %v485_v2, %v188_v5 }
  0x40   :  { %313 = vadd.xlane.f32.xlu1 %v312_v28  ;;  %v550_v28 = vadd.f32 %v239_v19, %v238_v18  ;;  %v402_v39 = vadd.f32 %v401_v26, %v121_v23  ;;  %v246_v10 = vld [vmem:[%s5233_s0 + $0x740] sm:$0xff]  ;;  %v189_v13 = vld [vmem:[%s5233_s0 + $0x578] sm:$0xff]  ;;  %v335_v16 = vadd.f32 %v67_v8, %v66_v7  ;;  %v68_v19 = vld [vmem:[%s5233_s0 + $0x1b0] sm:$0xff] }
  0x41   :  { %538 = vadd.xlane.f32.xlu0 %v537_v33  ;;  %v123_v33 = vld [vmem:[%s5233_s0 + $0x368] sm:$0xff]  ;;  %v129_v15 = vld [vmem:[%s5233_s0 + $0x398] sm:$0xff]  ;;  %v190_v21 = vld [vmem:[%s5233_s0 + $0x580] sm:$0xff]  ;;  %v487_v26 = vadd.f32 %v486_v14, %v189_v13 }
  0x42   :  { %v551_v40 = vadd.f32 %v550_v28, %v240_v31  ;;  %v191_v22 = vld [vmem:[%s5233_s0 + $0x588] sm:$0xff]  ;;  %v248_v23 = vld [vmem:[%s5233_s0 + $0x750] sm:$0xff]  ;;  %v130_v24 = vld [vmem:[%s5233_s0 + $0x3a0] sm:$0xff]  ;;  %v336_v28 = vadd.f32 %v335_v16, %v68_v19 }
  0x43   :  { %v69_v27 = vld [vmem:[%s5233_s0 + $0x1b8] sm:$0xff]  ;;  %v490_v30 = vadd.f32 %v191_v22, %v190_v21  ;;  %v70_v35 = vld [vmem:[%s5233_s0 + $0x1c0] sm:$0xff]  ;;  %v71_v36 = vld [vmem:[%s5233_s0 + $0x1c8] sm:$0xff] }
  0x44   :  { %468 = vadd.xlane.f32.xlu1 %v467_v42  ;;  %v405_v42 = vadd.f32 %v123_v33, %v122_v32  ;;  %v552_v53 = vadd.f32 %v551_v40, %v241_v37  ;;  %v249_v29 = vld [vmem:[%s5233_s0 + $0x758] sm:$0xff]  ;;  %v192_v33 = vld [vmem:[%s5233_s0 + $0x590] sm:$0xff]  ;;  %v250_v38 = vld [vmem:[%s5233_s0 + $0x760] sm:$0xff]  ;;  %v337_v40 = vadd.f32 %v336_v28, %v69_v27  ;;  %v340_v44 = vadd.f32 %v71_v36, %v70_v35 }
  0x45   :  { %393 = vadd.xlane.f32.xlu0 %v392_v47  ;;  %v243_v47 = vld [vmem:[%s5233_s0 + $0x728] sm:$0xff]  ;;  %v132_v37 = vld [vmem:[%s5233_s0 + $0x3b0] sm:$0xff]  ;;  %v193_v41 = vld [vmem:[%s5233_s0 + $0x598] sm:$0xff] }
  0x46   :  { %v406_v54 = vadd.f32 %v405_v42, %v124_v45  ;;  %v491_v42 = vadd.f32 %v490_v30, %v192_v33  ;;  %v133_v43 = vld [vmem:[%s5233_s0 + $0x3b8] sm:$0xff]  ;;  %v194_v49 = vld [vmem:[%s5233_s0 + $0x5a0] sm:$0xff]  ;;  %v195_v50 = vld [vmem:[%s5233_s0 + $0x5a8] sm:$0xff] }
  0x47   :  { %v134_v52 = vld [vmem:[%s5233_s0 + $0x3c0] sm:$0xff]  ;;  %v73_v55 = vld [vmem:[%s5233_s0 + $0x1d8] sm:$0xff]  ;;  %v495_v58 = vadd.f32 %v195_v50, %v194_v49  ;;  %v75_v0 = vld [vmem:[%s5233_s0 + $0x1e8] sm:$0xff] }
  0x48   :  { %318 = vadd.xlane.f32.xlu1 %v317_v56  ;;  %v555_v56 = vadd.f32 %v243_v47, %v242_v46  ;;  %v407_v3 = vadd.f32 %v406_v54, %v125_v51  ;;  %v72_v47 = vld [vmem:[%s5233_s0 + $0x1d0] sm:$0xff]  ;;  %v492_v54 = vadd.f32 %v491_v42, %v193_v41  ;;  %v253_v57 = vld [vmem:[%s5233_s0 + $0x778] sm:$0xff]  ;;  %v74_v63 = vld [vmem:[%s5233_s0 + $0x1e0] sm:$0xff] }
  0x49   :  { %543 = vadd.xlane.f32.xlu0 %v542_v61  ;;  %v127_v61 = vld [vmem:[%s5233_s0 + $0x388] sm:$0xff]  ;;  %v252_v51 = vld [vmem:[%s5233_s0 + $0x770] sm:$0xff]  ;;  %v254_v2 = vld [vmem:[%s5233_s0 + $0x780] sm:$0xff]  ;;  %v345_v8 = vadd.f32 %v75_v0, %v74_v63  ;;  %v735_v0 = vlaneseq }
  0x4a   :  { %v556_v4 = vadd.f32 %v555_v56, %v244_v59  ;;  %v341_v56 = vadd.f32 %v340_v44, %v72_v47  ;;  %v197_v5 = vld [vmem:[%s5233_s0 + $0x5b8] sm:$0xff]  ;;  %v198_v13 = vld [vmem:[%s5233_s0 + $0x5c0] sm:$0xff]  ;;  %v199_v14 = vld [vmem:[%s5233_s0 + $0x5c8] sm:$0xff] }
  0x4b   :  { %v137_v7 = vld [vmem:[%s5233_s0 + $0x3d8] sm:$0xff]  ;;  %v138_v16 = vld [vmem:[%s5233_s0 + $0x3e0] sm:$0xff]  ;;  %v500_v22 = vadd.f32 %v199_v14, %v198_v13  ;;  %v203_v28 = vld [vmem:[%s5233_s0 + $0x5e8] sm:$0xff] }
  0x4c   :  { %473 = vadd.xlane.f32.xlu1 %v472_v6  ;;  %v410_v6 = vadd.f32 %v127_v61, %v126_v60  ;;  %v557_v17 = vadd.f32 %v556_v4, %v245_v1  ;;  %v196_v61 = vld [vmem:[%s5233_s0 + $0x5b0] sm:$0xff]  ;;  %v342_v4 = vadd.f32 %v341_v56, %v73_v55  ;;  %v77_v19 = vld [vmem:[%s5233_s0 + $0x1f8] sm:$0xff]  ;;  %v202_v27 = vld [vmem:[%s5233_s0 + $0x5e0] sm:$0xff] }
  0x4d   :  { %398 = vadd.xlane.f32.xlu0 %v397_v11  ;;  %v247_v11 = vld [vmem:[%s5233_s0 + $0x748] sm:$0xff]  ;;  %v136_v1 = vld [vmem:[%s5233_s0 + $0x3d0] sm:$0xff]  ;;  %v257_v21 = vld [vmem:[%s5233_s0 + $0x798] sm:$0xff]  ;;  %v505_v36 = vadd.f32 %v203_v28, %v202_v27 }
  0x4e   :  { %v411_v18 = vadd.f32 %v410_v6, %v128_v9  ;;  %v496_v6 = vadd.f32 %v495_v58, %v196_v61  ;;  %v258_v30 = vld [vmem:[%s5233_s0 + $0x7a0] sm:$0xff]  ;;  %v201_v33 = vld [vmem:[%s5233_s0 + $0x5d8] sm:$0xff]  ;;  %v267_v42 = vld [vmem:[%s5233_s0 + $0x7e8] sm:$0xff] }
  0x4f   :  { %v141_v35 = vld [vmem:[%s5233_s0 + $0x3f8] sm:$0xff]  ;;  %v266_v41 = vld [vmem:[%s5233_s0 + $0x7e0] sm:$0xff]  ;;  %v264_v55 = vld [vmem:[%s5233_s0 + $0x7d0] sm:$0xff] }
  0x50   :  { %323 = vadd.xlane.f32.xlu1 %v322_v20  ;;  %v560_v20 = vadd.f32 %v247_v11, %v246_v10  ;;  %v412_v31 = vadd.f32 %v411_v18, %v129_v15  ;;  %v76_v11 = vld [vmem:[%s5233_s0 + $0x1f0] sm:$0xff]  ;;  %v497_v18 = vadd.f32 %v496_v6, %v197_v5  ;;  %v262_v44 = vld [vmem:[%s5233_s0 + $0x7c0] sm:$0xff]  ;;  %v205_v50 = vld [vmem:[%s5233_s0 + $0x5f8] sm:$0xff]  ;;  %v2172_v6 = vmov 0.0  }
  0x51   :  { %548 = vadd.xlane.f32.xlu0 %v547_v25  ;;  %v131_v25 = vld [vmem:[%s5233_s0 + $0x3a8] sm:$0xff]  ;;  %v256_v15 = vld [vmem:[%s5233_s0 + $0x790] sm:$0xff]  ;;  %v265_v61 = vld [vmem:[%s5233_s0 + $0x7d8] sm:$0xff]  ;;  %2114 = vmatprep.subr.mxu0 %v2172_v6 }
  0x52   :  { %v561_v32 = vadd.f32 %v560_v20, %v248_v23  ;;  %v346_v20 = vadd.f32 %v345_v8, %v76_v11  ;;  %2116 = vmatprep.mubr.msk.f32.mxu0 %vm2173_vm0, %v2172_v6  ;;  %2119 = vmatprep.subr.mxu1 %v2172_v6 }
  0x53   :  { %2151 = vmatprep.mubr.msk.f32.mxu1 %vm2173_vm0, %v2172_v6  ;;  %vm844_vm0 = vcmask 1048512  }
  0x54   :  { %478 = vadd.xlane.f32.xlu1 %v477_v34  ;;  %v415_v34 = vadd.f32 %v131_v25, %v130_v24  ;;  %v562_v45 = vadd.f32 %v561_v32, %v249_v29  ;;  %v200_v25 = vld [vmem:[%s5233_s0 + $0x5d0] sm:$0xff]  ;;  %v347_v32 = vadd.f32 %v346_v20, %v77_v19 }
  0x55   :  { %403 = vadd.xlane.f32.xlu0 %v402_v39  ;;  %v251_v39 = vld [vmem:[%s5233_s0 + $0x768] sm:$0xff]  ;;  %v140_v29 = vld [vmem:[%s5233_s0 + $0x3f0] sm:$0xff] }
  0x56   :  { %v416_v46 = vadd.f32 %v415_v34, %v132_v37  ;;  %v501_v34 = vadd.f32 %v500_v22, %v200_v25 }
  0x58   :  { %328 = vadd.xlane.f32.xlu1 %v327_v48  ;;  %v565_v48 = vadd.f32 %v251_v39, %v250_v38  ;;  %v417_v59 = vadd.f32 %v416_v46, %v133_v43  ;;  %v204_v39 = vld [vmem:[%s5233_s0 + $0x5f0] sm:$0xff]  ;;  %v502_v46 = vadd.f32 %v501_v34, %v201_v33  ;;  %v668_v34 = vld [vmem:[%s5235_s2 + $0x68] sm:$0xff] }
  0x59   :  { %553 = vadd.xlane.f32.xlu0 %v552_v53  ;;  %v135_v53 = vld [vmem:[%s5233_s0 + $0x3c8] sm:$0xff]  ;;  %v260_v43 = vld [vmem:[%s5233_s0 + $0x7b0] sm:$0xff]  ;;  %v506_v47 = vadd.f32 %v505_v36, %v204_v39 }
  0x5a   :  { %v566_v60 = vadd.f32 %v565_v48, %v252_v51  ;;  %v585_v48 = vadd.f32 %v267_v42, %v266_v41 }
  0x5b   :  { %v507_v56 = vadd.f32 %v506_v47, %v205_v50 }
  0x5c   :  { %483 = vadd.xlane.f32.xlu1 %v482_v62  ;;  %v420_v62 = vadd.f32 %v135_v53, %v134_v52  ;;  %v567_v9 = vadd.f32 %v566_v60, %v253_v57  ;;  %v268_v53 = vld [vmem:[%s5233_s0 + $0x7f0] sm:$0xff]  ;;  %v269_v60 = vld [vmem:[%s5233_s0 + $0x7f8] sm:$0xff] }
  0x5d   :  { %408 = vadd.xlane.f32.xlu0 %v407_v3  ;;  %v255_v3 = vld [vmem:[%s5233_s0 + $0x788] sm:$0xff]  ;;  %v586_v57 = vadd.f32 %v585_v48, %v268_v53  ;;  %v666_v53 = vld [vmem:[%s5235_s2 + $0x58] sm:$0xff] }
  0x5e   :  { %v421_v10 = vadd.f32 %v420_v62, %v136_v1  ;;  %v2962_v1 = vand.u32 127, %v735_v0 }
  0x5f   :  { %v587_v62 = vadd.f32 %v586_v57, %v269_v60 }
  0x60   :  { %333 = vadd.xlane.f32.xlu1 %v332_v12  ;;  %v570_v12 = vadd.f32 %v255_v3, %v254_v2  ;;  %v422_v23 = vadd.f32 %v421_v10, %v137_v7  ;;  %v2964_v2 = vshrl.u32 %v735_v0, 7  ;;  %v741_v3 = vadd.s32 4294967288, %v2962_v1  ;;  %v654_v7 = vld [vmem:[%s5234_s1] sm:$0xff] }
  0x61   :  { %558 = vadd.xlane.f32.xlu0 %v557_v17  ;;  %v139_v17 = vld [vmem:[%s5233_s0 + $0x3e8] sm:$0xff]  ;;  %2115 = vmatpush3.xpose.msra.mxu0 %v654_v7  ;;  %v748_v11 = vadd.s32 4294967280, %v2962_v1  ;;  %v762_v50 = vadd.s32 4294967264, %v2962_v1  ;;  %v769_v7 = vadd.s32 4294967256, %v2962_v1 }
  0x62   :  { %v571_v24 = vadd.f32 %v570_v12, %v256_v15  ;;  %v2975_v8 = vsub.s32 %v2962_v1, %v2964_v2  ;;  %v2978_v10 = vsub.s32 %v741_v3, %v2964_v2 }
  0x63   :  { %v2988_v20 = vsub.s32 %v748_v11, %v2964_v2 }
  0x64   :  { %488 = vadd.xlane.f32.xlu1 %v487_v26  ;;  %v425_v26 = vadd.f32 %v139_v17, %v138_v16  ;;  %v572_v37 = vadd.f32 %v571_v24, %v257_v21  ;;  %v670_v17 = vld [vmem:[%s5235_s2 + $0x78] sm:$0xff]  ;;  %v669_v24 = vld [vmem:[%s5235_s2 + $0x70] sm:$0xff] }
  0x65   :  { %413 = vadd.xlane.f32.xlu0 %v412_v31  ;;  %v259_v31 = vld [vmem:[%s5233_s0 + $0x7a8] sm:$0xff]  ;;  %2120 = vmatpush3.xpose.msk.msra.mxu1 %vm1161_vm1, %v670_v17 }
  0x66   :  { %v426_v38 = vadd.f32 %v425_v26, %v140_v29  ;;  %2121 = vmatprep.subr.mxu1 %v2172_v6 }
  0x68   :  { %338 = vadd.xlane.f32.xlu1 %v337_v40  ;;  %v575_v40 = vadd.f32 %v259_v31, %v258_v30  ;;  %v427_v49 = vadd.f32 %v426_v38, %v141_v35  ;;  %v755_v31 = vadd.s32 4294967272, %v2962_v1 }
  0x69   :  { %563 = vadd.xlane.f32.xlu0 %v562_v45  ;;  %v263_v45 = vld [vmem:[%s5233_s0 + $0x7c8] sm:$0xff]  ;;  %2122 = vmatpush3.xpose.msk.msra.mxu1 %vm1161_vm1, %v669_v24 }
  0x6a   :  { %v576_v51 = vadd.f32 %v575_v40, %v260_v43  ;;  %v580_v52 = vadd.f32 %v263_v45, %v262_v44  ;;  %2123 = vmatprep.subr.mxu1 %v2172_v6  ;;  %v3011_v41 = vsub.s32 %v755_v31, %v2964_v2  ;;  %v667_v44 = vld [vmem:[%s5235_s2 + $0x60] sm:$0xff] }
  0x6c   :  { %493 = vadd.xlane.f32.xlu1 %v492_v54  ;;  %v261_v54 = vld [vmem:[%s5233_s0 + $0x7b8] sm:$0xff] }
  0x6d   :  { %418 = vadd.xlane.f32.xlu0 %v417_v59  ;;  %v577_v58 = vadd.f32 %v576_v51, %v261_v54  ;;  %v581_v59 = vadd.f32 %v580_v52, %v264_v55  ;;  %2124 = vmatpush3.xpose.msk.msra.mxu1 %vm1161_vm1, %v668_v34 }
  0x6e   :  { %2125 = vmatprep.subr.mxu1 %v2172_v6 }
  0x6f   :  { %v582_v63 = vadd.f32 %v581_v59, %v265_v61 }
  0x70   :  { %343 = vadd.xlane.f32.xlu1 %v342_v4 }
  0x71   :  { %568 = vadd.xlane.f32.xlu0 %v567_v9  ;;  %2126 = vmatpush3.xpose.msk.msra.mxu1 %vm1161_vm1, %v667_v44 }
  0x72   :  { %2127 = vmatprep.subr.mxu1 %v2172_v6 }
  0x74   :  { %498 = vadd.xlane.f32.xlu1 %v497_v18 }
  0x75   :  { %423 = vadd.xlane.f32.xlu0 %v422_v23  ;;  %2128 = vmatpush3.xpose.msk.msra.mxu1 %vm1161_vm1, %v666_v53 }
  0x76   :  { %2129 = vmatprep.subr.mxu1 %v2172_v6 }
  0x78   :  { %348 = vadd.xlane.f32.xlu1 %v347_v32 }
  0x79   :  { %573 = vadd.xlane.f32.xlu0 %v572_v37 }
  0x7c   :  { %503 = vadd.xlane.f32.xlu1 %v502_v46 }
  0x7d   :  { %428 = vadd.xlane.f32.xlu0 %v427_v49 }
  0x80   :  { %508 = vadd.xlane.f32.xlu1 %v507_v56 }
  0x81   :  { %578 = vadd.xlane.f32.xlu0 %v577_v58  ;;  %v3031_v58 = vsub.s32 %v762_v50, %v2964_v2 }
  0x84   :  { %588 = vadd.xlane.f32.xlu1 %v587_v62  ;;  %v665_v62 = vld [vmem:[%s5235_s2 + $0x50] sm:$0xff] }
  0x85   :  { %583 = vadd.xlane.f32.xlu0 %v582_v63  ;;  %2130 = vmatpush3.xpose.msk.msra.mxu1 %vm1161_vm1, %v665_v62  ;;  %v659_v62 = vld [vmem:[%s5235_s2 + $0x20] sm:$0xff] }
  0x86   :  { %2131 = vmatprep.subr.mxu1 %v2172_v6 }
  0x91   :  { %v354_v4 = vpop.xlane.xlu1 %353 }
  0x92   :  { %v274_v5 = vpop.xlane.xlu0 %273  ;;  %v606_v9 = vmul.f32 0.001953125, %v354_v4 }
  0x93   :  { %v590_v12 = vmul.f32 0.001953125, %v274_v5 }
  0x94   :  { %v849_v18 = vrot.slane %v606_v9, %v2975_v8 }
  0x95   :  { %v359_v13 = vpop.xlane.xlu1 %358  ;;  %v740_v21 = vrot.slane %v590_v12, %v2975_v8 }
  0x96   :  { %v607_v14 = vmul.f32 0.001953125, %v359_v13  ;;  %v279_v15 = vpop.xlane.xlu0 %278  ;;  %v664_v13 = vld [vmem:[%s5235_s2 + $0x48] sm:$0xff] }
  0x97   :  { %v591_v16 = vmul.f32 0.001953125, %v279_v15  ;;  %2132 = vmatpush3.xpose.msk.msra.mxu1 %vm1161_vm1, %v664_v13 }
  0x98   :  { %v853_v19 = vrot.slane %v607_v14, %v2978_v10  ;;  %2133 = vmatprep.subr.mxu1 %v2172_v6 }
  0x99   :  { %v745_v22 = vrot.slane %v591_v16, %v2978_v10  ;;  %v364_v23 = vpop.xlane.xlu1 %363 }
  0x9a   :  { %v854_v25 = vsel %vm746_vm2, %v853_v19, %v849_v18  ;;  %v608_v26 = vmul.f32 0.001953125, %v364_v23  ;;  %v284_v27 = vpop.xlane.xlu0 %283 }
  0x9b   :  { %v747_v28 = vsel %vm746_vm2, %v745_v22, %v740_v21  ;;  %v592_v29 = vmul.f32 0.001953125, %v284_v27  ;;  %v663_v22 = vld [vmem:[%s5235_s2 + $0x40] sm:$0xff] }
  0x9c   :  { %v858_v30 = vrot.slane %v608_v26, %v2988_v20  ;;  %2134 = vmatpush3.xpose.msk.msra.mxu1 %vm1161_vm1, %v663_v22 }
  0x9d   :  { %v752_v32 = vrot.slane %v592_v29, %v2988_v20  ;;  %v439_v33 = vpop.xlane.xlu1 %438  ;;  %v776_v29 = vadd.s32 4294967248, %v2962_v1  ;;  %2135 = vmatprep.subr.mxu1 %v2172_v6 }
  0x9e   :  { %v859_v35 = vsel %vm753_vm3, %v858_v30, %v854_v25  ;;  %v623_v36 = vmul.f32 0.001953125, %v439_v33  ;;  %v434_v37 = vpop.xlane.xlu0 %433 }
  0x9f   :  { %v754_v38 = vsel %vm753_vm3, %v752_v32, %v747_v28  ;;  %v622_v39 = vmul.f32 0.001953125, %v434_v37  ;;  %v662_v32 = vld [vmem:[%s5235_s2 + $0x38] sm:$0xff] }
  0xa0   :  { %v932_v40 = vrot.slane %v623_v36, %v2978_v10  ;;  %2136 = vmatpush3.xpose.msk.msra.mxu1 %vm1161_vm1, %v662_v32 }
  0xa1   :  { %v928_v42 = vrot.slane %v622_v39, %v2975_v8  ;;  %v369_v43 = vpop.xlane.xlu1 %368  ;;  %v3075_v39 = vsub.s32 %v776_v29, %v2964_v2  ;;  %2137 = vmatprep.subr.mxu1 %v2172_v6 }
  0xa2   :  { %v609_v45 = vmul.f32 0.001953125, %v369_v43  ;;  %v289_v46 = vpop.xlane.xlu0 %288 }
  0xa3   :  { %v933_v47 = vsel %vm746_vm2, %v932_v40, %v928_v42  ;;  %v593_v48 = vmul.f32 0.001953125, %v289_v46  ;;  %v661_v42 = vld [vmem:[%s5235_s2 + $0x30] sm:$0xff] }
  0xa4   :  { %v863_v49 = vrot.slane %v609_v45, %v3011_v41  ;;  %2138 = vmatpush3.xpose.msk.msra.mxu1 %vm1161_vm1, %v661_v42 }
  0xa5   :  { %v759_v51 = vrot.slane %v593_v48, %v3011_v41  ;;  %v514_v52 = vpop.xlane.xlu1 %513  ;;  %2139 = vmatprep.subr.mxu1 %v2172_v6 }
  0xa6   :  { %v864_v54 = vsel %vm760_vm4, %v863_v49, %v859_v35  ;;  %v444_v55 = vpop.xlane.xlu0 %443  ;;  %v638_v59 = vmul.f32 0.001953125, %v514_v52  ;;  %v783_v49 = vadd.s32 4294967240, %v2962_v1  ;;  %v660_v52 = vld [vmem:[%s5235_s2 + $0x28] sm:$0xff] }
  0xa7   :  { %v761_v56 = vsel %vm760_vm4, %v759_v51, %v754_v38  ;;  %v624_v57 = vmul.f32 0.001953125, %v444_v55 }
  0xa8   :  { %v1007_v9 = vrot.slane %v638_v59, %v2975_v8  ;;  %v3053_v8 = vsub.s32 %v769_v7, %v2964_v2  ;;  %2140 = vmatpush3.xpose.msk.msra.mxu1 %vm1161_vm1, %v660_v52 }
  0xa9   :  { %v937_v60 = vrot.slane %v624_v57, %v2988_v20  ;;  %v294_v61 = vpop.xlane.xlu1 %293  ;;  %2141 = vmatprep.subr.mxu1 %v2172_v6 }
  0xaa   :  { %v594_v63 = vmul.f32 0.001953125, %v294_v61  ;;  %v519_v0 = vpop.xlane.xlu0 %518 }
  0xab   :  { %v938_v3 = vsel %vm753_vm3, %v937_v60, %v933_v47  ;;  %v639_v4 = vmul.f32 0.001953125, %v519_v0  ;;  %v3097_v60 = vsub.s32 %v783_v49, %v2964_v2 }
  0xac   :  { %v766_v5 = vrot.slane %v594_v63, %v3031_v58  ;;  %2142 = vmatpush3.xpose.msk.msra.mxu1 %vm1161_vm1, %v659_v62 }
  0xad   :  { %v1011_v11 = vrot.slane %v639_v4, %v2978_v10  ;;  %v449_v12 = vpop.xlane.xlu1 %448  ;;  %2143 = vmatprep.subr.mxu1 %v2172_v6 }
  0xae   :  { %v768_v14 = vsel %vm767_vm5, %v766_v5, %v761_v56  ;;  %v625_v15 = vmul.f32 0.001953125, %v449_v12  ;;  %v374_v16 = vpop.xlane.xlu0 %373  ;;  %v658_v12 = vld [vmem:[%s5235_s2 + $0x18] sm:$0xff] }
  0xaf   :  { %v1012_v17 = vsel %vm746_vm2, %v1011_v11, %v1007_v9  ;;  %v610_v18 = vmul.f32 0.001953125, %v374_v16  ;;  %vm1083_vm2 = vcmask 1041409  }
  0xb0   :  { %v942_v19 = vrot.slane %v625_v15, %v3011_v41  ;;  %2144 = vmatpush3.xpose.msk.msra.mxu1 %vm1161_vm1, %v658_v12 }
  0xb1   :  { %v868_v10 = vrot.slane %v610_v18, %v3031_v58  ;;  %v299_v21 = vpop.xlane.xlu1 %298  ;;  %2145 = vmatprep.subr.mxu1 %v2172_v6 }
  0xb2   :  { %v943_v23 = vsel %vm760_vm4, %v942_v19, %v938_v3  ;;  %v595_v24 = vmul.f32 0.001953125, %v299_v21  ;;  %v524_v25 = vpop.xlane.xlu0 %523  ;;  %v656_v19 = vld [vmem:[%s5235_s2 + $0x8] sm:$0xff] }
  0xb3   :  { %v869_v26 = vsel %vm767_vm5, %v868_v10, %v864_v54  ;;  %v640_v27 = vmul.f32 0.001953125, %v524_v25 }
  0xb4   :  { %v773_v28 = vrot.slane %v595_v24, %v3053_v8 }
  0xb5   :  { %v1016_v30 = vrot.slane %v640_v27, %v2988_v20  ;;  %v454_v31 = vpop.xlane.xlu1 %453 }
  0xb6   :  { %v775_v33 = vsel %vm774_vm6, %v773_v28, %v768_v14  ;;  %v626_v34 = vmul.f32 0.001953125, %v454_v31  ;;  %v379_v35 = vpop.xlane.xlu0 %378 }
  0xb7   :  { %v1017_v36 = vsel %vm753_vm3, %v1016_v30, %v1012_v17  ;;  %v611_v37 = vmul.f32 0.001953125, %v379_v35  ;;  %vm1085_vm3 = vcmask 1042434  }
  0xb8   :  { %v947_v38 = vrot.slane %v626_v34, %v3031_v58 }
  0xb9   :  { %v873_v20 = vrot.slane %v611_v37, %v3053_v8  ;;  %v304_v40 = vpop.xlane.xlu1 %303 }
  0xba   :  { %v948_v43 = vsel %vm767_vm5, %v947_v38, %v943_v23  ;;  %v596_v44 = vmul.f32 0.001953125, %v304_v40  ;;  %v529_v45 = vpop.xlane.xlu0 %528  ;;  %v804_v38 = vadd.s32 4294967216, %v2962_v1  ;;  %v818_v40 = vadd.s32 4294967200, %v2962_v1 }
  0xbb   :  { %v874_v46 = vsel %vm774_vm6, %v873_v20, %v869_v26  ;;  %v641_v47 = vmul.f32 0.001953125, %v529_v45  ;;  %v811_v20 = vadd.s32 4294967208, %v2962_v1 }
  0xbc   :  { %v780_v48 = vrot.slane %v596_v44, %v3075_v39 }
  0xbd   :  { %v1021_v50 = vrot.slane %v641_v47, %v3011_v41  ;;  %v459_v51 = vpop.xlane.xlu1 %458  ;;  %v3172_v52 = vsub.s32 %v811_v20, %v2964_v2 }
  0xbe   :  { %v782_v53 = vsel %vm781_vm7, %v780_v48, %v775_v33  ;;  %v627_v54 = vmul.f32 0.001953125, %v459_v51  ;;  %v384_v55 = vpop.xlane.xlu0 %383  ;;  %v825_v48 = vadd.s32 4294967192, %v2962_v1  ;;  %v3169_v51 = vsub.s32 %v804_v38, %v2964_v2 }
  0xbf   :  { %v1022_v56 = vsel %vm760_vm4, %v1021_v50, %v1017_v36  ;;  %v612_v57 = vmul.f32 0.001953125, %v384_v55  ;;  %v797_v36 = vadd.s32 4294967224, %v2962_v1  ;;  %vm1087_vm4 = vcmask 1043459  }
  0xc0   :  { %v952_v59 = vrot.slane %v627_v54, %v3053_v8 }
  0xc1   :  { %v878_v41 = vrot.slane %v612_v57, %v3075_v39  ;;  %v309_v61 = vpop.xlane.xlu1 %308  ;;  %v3163_v47 = vsub.s32 %v797_v36, %v2964_v2  ;;  %v839_v57 = vadd.s32 4294967176, %v2962_v1 }
  0xc2   :  { %v3106_v63 = vsel %vm774_vm6, %v952_v59, %v948_v43  ;;  %v597_v0 = vmul.f32 0.001953125, %v309_v61  ;;  %v534_v3 = vpop.xlane.xlu0 %533 }
  0xc3   :  { %v3109_v4 = vsel %vm781_vm7, %v878_v41, %v874_v46  ;;  %v642_v5 = vmul.f32 0.001953125, %v534_v3 }
  0xc4   :  { %v787_v7 = vrot.slane %v597_v0, %v3097_v60 }
  0xc5   :  { %v1026_v9 = vrot.slane %v642_v5, %v3031_v58  ;;  %v464_v11 = vpop.xlane.xlu1 %463  ;;  %v657_v58 = vld [vmem:[%s5235_s2 + $0x10] sm:$0xff] }
  0xc6   :  { %v3119_v13 = vsel %vm788_vm8, %v787_v7, %v782_v53  ;;  %v389_v14 = vpop.xlane.xlu0 %388  ;;  %2146 = vmatpush3.xpose.msk.msra.mxu1 %vm1161_vm1, %v657_v58  ;;  %v628_v42 = vmul.f32 0.001953125, %v464_v11  ;;  %v832_v53 = vadd.s32 4294967184, %v2962_v1 }
  0xc7   :  { %v3122_v15 = vsel %vm767_vm5, %v1026_v9, %v1022_v56  ;;  %2147 = vmatprep.subr.mxu1 %v2172_v6  ;;  %v613_v43 = vmul.f32 0.001953125, %v389_v14  ;;  %v3176_v56 = vsub.s32 %v818_v40, %v2964_v2  ;;  %v3185_v9 = vsub.s32 %v825_v48, %v2964_v2 }
  0xc8   :  { %v957_v59 = vrot.slane %v628_v42, %v3075_v39 }
  0xc9   :  { %v314_v16 = vpop.xlane.xlu1 %313  ;;  %v883_v41 = vrot.slane %v613_v43, %v3097_v60 }
  0xca   :  { %v539_v17 = vpop.xlane.xlu0 %538  ;;  %2148 = vmatpush3.xpose.msk.msra.mxu1 %vm1161_vm1, %v656_v19  ;;  %v598_v46 = vmul.f32 0.001953125, %v314_v16  ;;  %v3189_v16 = vsub.s32 %v832_v53, %v2964_v2  ;;  %v3194_v19 = vsub.s32 %v839_v57, %v2964_v2 }
  0xcb   :  { %2149 = vmatprep.subr.mxu1 %v2172_v6  ;;  %v790_v6 = vadd.s32 4294967232, %v2962_v1  ;;  %v643_v50 = vmul.f32 0.001953125, %v539_v17 }
  0xcd   :  { %v469_v18 = vpop.xlane.xlu1 %468  ;;  %v3158_v44 = vsub.s32 %v790_v6, %v2964_v2  ;;  %v1031_v12 = vrot.slane %v643_v50, %v3053_v8  ;;  %v884_v8 = vsel %vm788_vm8, %v883_v41, %v3109_v4 }
  0xce   :  { %v394_v10 = vpop.xlane.xlu0 %393  ;;  %v629_v54 = vmul.f32 0.001953125, %v469_v18 }
  0xcf   :  { %v614_v55 = vmul.f32 0.001953125, %v394_v10  ;;  %v794_v3 = vrot.slane %v598_v46, %v3158_v44  ;;  %v958_v10 = vsel %vm781_vm7, %v957_v59, %v3106_v63  ;;  %v1032_v63 = vsel %vm774_vm6, %v1031_v12, %v3122_v15 }
  0xd0   :  { %v962_v58 = vrot.slane %v629_v54, %v3097_v60 }
  0xd1   :  { %v319_v21 = vpop.xlane.xlu1 %318  ;;  %v888_v17 = vrot.slane %v614_v55, %v3158_v44 }
  0xd2   :  { %v544_v22 = vpop.xlane.xlu0 %543  ;;  %v599_v61 = vmul.f32 0.001953125, %v319_v21  ;;  %v963_v38 = vsel %vm788_vm8, %v962_v58, %v958_v10 }
  0xd3   :  { %v644_v62 = vmul.f32 0.001953125, %v544_v22 }
  0xd4   :  { %v801_v21 = vrot.slane %v599_v61, %v3163_v47 }
  0xd5   :  { %v474_v23 = vpop.xlane.xlu1 %473  ;;  %v1036_v22 = vrot.slane %v644_v62, %v3075_v39 }
  0xd6   :  { %v399_v24 = vpop.xlane.xlu0 %398  ;;  %v630_v5 = vmul.f32 0.001953125, %v474_v23 }
  0xd7   :  { %v615_v7 = vmul.f32 0.001953125, %v399_v24  ;;  %v796_v24 = vsel %vm795_vm9, %v794_v3, %v3119_v13  ;;  %v889_v13 = vsel %vm795_vm9, %v888_v17, %v884_v8  ;;  %v1037_v42 = vsel %vm781_vm7, %v1036_v22, %v1032_v63 }
  0xd8   :  { %v803_v40 = vsel %vm802_vm10, %v801_v21, %v796_v24 }
  0xd9   :  { %v324_v25 = vpop.xlane.xlu1 %323 }
  0xda   :  { %v549_v26 = vpop.xlane.xlu0 %548  ;;  %v600_v14 = vmul.f32 0.001953125, %v324_v25  ;;  %v967_v25 = vrot.slane %v630_v5, %v3158_v44 }
  0xdb   :  { %v645_v1 = vmul.f32 0.001953125, %v549_v26  ;;  %v893_v26 = vrot.slane %v615_v7, %v3163_v47 }
  0xdc   :  { %v808_v4 = vrot.slane %v600_v14, %v3169_v51 }
  0xdd   :  { %v479_v27 = vpop.xlane.xlu1 %478  ;;  %v1041_v36 = vrot.slane %v645_v1, %v3097_v60  ;;  %v894_v46 = vsel %vm802_vm10, %v893_v26, %v889_v13 }
  0xde   :  { %v404_v28 = vpop.xlane.xlu0 %403  ;;  %v631_v18 = vmul.f32 0.001953125, %v479_v27  ;;  %v810_v53 = vsel %vm809_vm11, %v808_v4, %v803_v40 }
  0xdf   :  { %v616_v27 = vmul.f32 0.001953125, %v404_v28  ;;  %v3229_v54 = vsel %vm788_vm8, %v1041_v36, %v1037_v42 }
  0xe0   :  { %v972_v20 = vrot.slane %v631_v18, %v3163_v47 }
  0xe1   :  { %v3136_v29 = vpop.xlane.xlu1 %328  ;;  %v898_v48 = vrot.slane %v616_v27, %v3169_v51 }
  0xe2   :  { %v3138_v30 = vpop.xlane.xlu0 %553  ;;  %v601_v39 = vmul.f32 0.001953125, %v3136_v29  ;;  %v968_v29 = vsel %vm795_vm9, %v967_v25, %v963_v38 }
  0xe3   :  { %v3225_v50 = vmul.f32 0.001953125, %v3138_v30  ;;  %v973_v55 = vsel %vm802_vm10, %v972_v20, %v968_v29 }
  0xe5   :  { %v3140_v31 = vpop.xlane.xlu1 %483  ;;  %v1046_v7 = vrot.slane %v3225_v50, %v3158_v44 }
  0xe6   :  { %v3142_v32 = vpop.xlane.xlu0 %408  ;;  %v632_v28 = vmul.f32 0.001953125, %v3140_v31 }
  0xe7   :  { %v617_v15 = vmul.f32 0.001953125, %v3142_v32  ;;  %v815_v32 = vrot.slane %v601_v39, %v3172_v52 }
  0xe8   :  { %v977_v57 = vrot.slane %v632_v28, %v3169_v51 }
  0xe9   :  { %v3144_v33 = vpop.xlane.xlu1 %333  ;;  %v903_v41 = vrot.slane %v617_v15, %v3172_v52 }
  0xea   :  { %v3146_v34 = vpop.xlane.xlu0 %558  ;;  %v602_v43 = vmul.f32 0.001953125, %v3144_v33 }
  0xeb   :  { %v647_v62 = vmul.f32 0.001953125, %v3146_v34  ;;  %v978_v34 = vsel %vm809_vm11, %v977_v57, %v973_v55  ;;  %v1047_v57 = vsel %vm795_vm9, %v1046_v7, %v3229_v54 }
  0xec   :  { %v822_v61 = vrot.slane %v602_v43, %v3176_v56 }
  0xed   :  { %v3149_v35 = vpop.xlane.xlu1 %488  ;;  %v1051_v21 = vrot.slane %v647_v62, %v3163_v47 }
  0xee   :  { %v3152_v37 = vpop.xlane.xlu0 %413  ;;  %v633_v33 = vmul.f32 0.001953125, %v3149_v35  ;;  %v899_v35 = vsel %vm809_vm11, %v898_v48, %v894_v46 }
  0xef   :  { %v618_v59 = vmul.f32 0.001953125, %v3152_v37  ;;  %v904_v44 = vsel %vm816_vm12, %v903_v41, %v899_v35 }
  0xf0   :  { %v982_v1 = vrot.slane %v633_v33, %v3172_v52 }
  0xf1   :  { %v3160_v45 = vpop.xlane.xlu1 %338 }
  0xf2   :  { %v3166_v49 = vpop.xlane.xlu0 %563  ;;  %v603_v30 = vmul.f32 0.001953125, %v3160_v45  ;;  %v817_v45 = vsel %vm816_vm12, %v815_v32, %v810_v53  ;;  %v983_v63 = vsel %vm816_vm12, %v982_v1, %v978_v34 }
  0xf3   :  { %v824_v8 = vsel %vm823_vm13, %v822_v61, %v817_v45  ;;  %v1052_v61 = vsel %vm802_vm10, %v1051_v21, %v1047_v57  ;;  %v1355_v21 = vsub.s32 0, %v2964_v2  ;;  %v1313_v57 = vld [vmem:[%s5233_s0 + $0x300] sm:$0xff] }
  0xf4   :  { %v829_v18 = vrot.slane %v603_v30, %v3185_v9 }
  0xf5   :  { %v3181_v0 = vpop.xlane.xlu1 %493 }
  0xf6   :  { %v419_v11 = vpop.xlane.xlu0 %418  ;;  %v634_v58 = vmul.f32 0.001953125, %v3181_v0  ;;  %v648_v0 = vmul.f32 0.001953125, %v3166_v49  ;;  %v831_v38 = vsel %vm830_vm14, %v829_v18, %v824_v8 }
  0xf7   :  { %v619_v3 = vmul.f32 0.001953125, %v419_v11  ;;  %v908_v11 = vrot.slane %v618_v59, %v3176_v56 }
  0xf8   :  { %v987_v4 = vrot.slane %v634_v58, %v3176_v56  ;;  %v1056_v43 = vrot.slane %v648_v0, %v3169_v51  ;;  %v1291_v0 = vld [vmem:[%s5233_s0 + $0x40] sm:$0xff] }
  0xf9   :  { %v344_v23 = vpop.xlane.xlu1 %343  ;;  %v913_v22 = vrot.slane %v619_v3, %v3185_v9  ;;  %v909_v47 = vsel %vm823_vm13, %v908_v11, %v904_v44 }
  0xfa   :  { %v3206_v6 = vpop.xlane.xlu0 %568  ;;  %v604_v12 = vmul.f32 0.001953125, %v344_v23  ;;  %v1057_v35 = vsel %vm809_vm11, %v1056_v43, %v1052_v61  ;;  %v1307_v43 = vld [vmem:[%s5233_s0 + $0x240] sm:$0xff] }
  0xfb   :  { %v649_v13 = vmul.f32 0.001953125, %v3206_v6  ;;  %v914_v20 = vsel %vm830_vm14, %v913_v22, %v909_v47  ;;  %v988_v6 = vsel %vm823_vm13, %v987_v4, %v983_v63  ;;  %v1289_v22 = vld [vmem:[%s5233_s0] sm:$0xff] }
  0xfc   :  { %v836_v24 = vrot.slane %v604_v12, %v3189_v16  ;;  %v1293_v63 = vld [vmem:[%s5233_s0 + $0x80] sm:$0xff] }
  0xfd   :  { %v499_v60 = vpop.xlane.xlu1 %498  ;;  %v1061_v32 = vrot.slane %v649_v13, %v3172_v52  ;;  %v1294_v4 = vld [vmem:[%s5233_s0 + $0xa0] sm:$0xff] }
  0xfe   :  { %v424_v31 = vpop.xlane.xlu0 %423  ;;  %v635_v10 = vmul.f32 0.001953125, %v499_v60  ;;  %v838_v60 = vsel %vm837_vm15, %v836_v24, %v831_v38  ;;  %v1292_v24 = vld [vmem:[%s5233_s0 + $0x60] sm:$0xff] }
  0xff   :  { %v620_v14 = vmul.f32 0.001953125, %v424_v31  ;;  %v1062_v54 = vsel %vm816_vm12, %v1061_v32, %v1057_v35  ;;  %v1298_v38 = vld [vmem:[%s5233_s0 + $0x120] sm:$0xff] }
 0x100   :  { %v992_v49 = vrot.slane %v635_v10, %v3185_v9  ;;  %v1299_v13 = vld [vmem:[%s5233_s0 + $0x140] sm:$0xff] }
 0x101   :  { %v349_v5 = vpop.xlane.xlu1 %348  ;;  %v918_v25 = vrot.slane %v620_v14, %v3189_v16 }
 0x102   :  { %v574_v37 = vpop.xlane.xlu0 %573  ;;  %v605_v17 = vmul.f32 0.001953125, %v349_v5  ;;  %v993_v33 = vsel %vm830_vm14, %v992_v49, %v988_v6  ;;  %v1300_v49 = vld [vmem:[%s5233_s0 + $0x160] sm:$0xff] }
 0x103   :  { %v650_v28 = vmul.f32 0.001953125, %v574_v37  ;;  %v919_v29 = vsel %vm837_vm15, %v918_v25, %v914_v20  ;;  %v1551_v25 = vsub.s32 1, %v2964_v2  ;;  %v1301_v20 = vld [vmem:[%s5233_s0 + $0x180] sm:$0xff] }
 0x104   :  { %v843_v36 = vrot.slane %v605_v17, %v3194_v19  ;;  %v655_v17 = vld [vmem:[%s5235_s2] sm:$0xff] }
 0x105   :  { %v504_v23 = vpop.xlane.xlu1 %503  ;;  %v1066_v59 = vrot.slane %v650_v28, %v3176_v56  ;;  %2150 = vmatpush3.xpose.msk.msra.mxu1 %vm1161_vm1, %v655_v17  ;;  %v1302_v28 = vld [vmem:[%s5233_s0 + $0x1a0] sm:$0xff] }
 0x106   :  { %v636_v26 = vmul.f32 0.001953125, %v504_v23  ;;  %v429_v27 = vpop.xlane.xlu0 %428  ;;  %v845_v50 = vsel %vm844_vm0, %v843_v36, %v838_v60  ;;  %v1290_v23 = vld [vmem:[%s5233_s0 + $0x20] sm:$0xff] }
 0x107   :  { %v621_v39 = vmul.f32 0.001953125, %v429_v27  ;;  %v1067_v7 = vsel %vm823_vm13, %v1066_v59, %v1062_v54  ;;  %v1943_v27 = vsub.s32 3, %v2964_v2  ;;  %v1295_v36 = vld [vmem:[%s5233_s0 + $0xc0] sm:$0xff] }
 0x108   :  { %v997_v40 = vrot.slane %v636_v26, %v3189_v16  ;;  %v1747_v26 = vsub.s32 2, %v2964_v2  ;;  %v1297_v2 = vld [vmem:[%s5233_s0 + $0x100] sm:$0xff] }
 0x109   :  { %v923_v42 = vrot.slane %v621_v39, %v3194_v19  ;;  %v509_v15 = vpop.xlane.xlu1 %508  ;;  %v1296_v39 = vld [vmem:[%s5233_s0 + $0xe0] sm:$0xff] }
 0x10a   :  { %v637_v46 = vmul.f32 0.001953125, %v509_v15  ;;  %v579_v48 = vpop.xlane.xlu0 %578  ;;  %v998_v30 = vsel %vm837_vm15, %v997_v40, %v993_v33  ;;  %v1306_v15 = vld [vmem:[%s5233_s0 + $0x220] sm:$0xff] }
 0x10b   :  { %v924_v31 = vsel %vm844_vm0, %v923_v42, %v919_v29  ;;  %v651_v53 = vmul.f32 0.001953125, %v579_v48  ;;  %v1305_v42 = vld [vmem:[%s5233_s0 + $0x200] sm:$0xff] }
 0x10c   :  { %v1002_v55 = vrot.slane %v637_v46, %v3194_v19  ;;  %v1084_v51 = vsel %vm1083_vm2, %v924_v31, %v845_v50  ;;  %v1308_v60 = vld [vmem:[%s5233_s0 + $0x260] sm:$0xff] }
 0x10d   :  { %v589_v41 = vpop.xlane.xlu1 %588  ;;  %v1071_v62 = vrot.slane %v651_v53, %v3185_v9  ;;  %v1309_v6 = vld [vmem:[%s5233_s0 + $0x280] sm:$0xff] }
 0x10e   :  { %v584_v3 = vpop.xlane.xlu0 %583  ;;  %v653_v52 = vmul.f32 0.001953125, %v589_v41  ;;  %v1003_v5 = vsel %vm844_vm0, %v1002_v55, %v998_v30  ;;  %v1310_v50 = vld [vmem:[%s5233_s0 + $0x2a0] sm:$0xff] }
 0x10f   :  { %v652_v12 = vmul.f32 0.001953125, %v584_v3  ;;  %v1086_v14 = vsel %vm1085_vm3, %v1003_v5, %v1084_v51  ;;  %v1072_v45 = vsel %vm830_vm14, %v1071_v62, %v1067_v7  ;;  %v1311_v31 = vld [vmem:[%s5233_s0 + $0x2c0] sm:$0xff] }
 0x110   :  { %v1081_v56 = vrot.slane %v653_v52, %v3194_v19  ;;  %v1312_v51 = vld [vmem:[%s5233_s0 + $0x2e0] sm:$0xff] }
 0x111   :  { %v1076_v37 = vrot.slane %v652_v12, %v3189_v16  ;;  %v1314_v59 = vld [vmem:[%s5233_s0 + $0x320] sm:$0xff] }
 0x112   :  { %v1315_v3 = vld [vmem:[%s5233_s0 + $0x340] sm:$0xff] }
 0x113   :  { %v1077_v9 = vsel %vm837_vm15, %v1076_v37, %v1072_v45  ;;  %v1316_v52 = vld [vmem:[%s5233_s0 + $0x360] sm:$0xff] }
 0x114   :  { %v1082_v1 = vsel %vm844_vm0, %v1081_v56, %v1077_v9  ;;  %v1317_v5 = vld [vmem:[%s5233_s0 + $0x380] sm:$0xff] }
 0x115   :  { %v1088_v58 = vsel %vm1087_vm4, %v1082_v1, %v1086_v14  ;;  %v3417_v56 = vld [vmem:[%s5233_s0 + $0x400] sm:$0xff] }
 0x116   :  { %2117 = vmatmul.mubr.f32.vlgmr.msra.gmra.mxu0 %v1088_v58  ;;  %v3422_v7 = vld [vmem:[%s5233_s0 + $0x420] sm:$0xff] }
 0x117   :  { %v3427_v37 = vld [vmem:[%s5233_s0 + $0x440] sm:$0xff] }
 0x118   :  { %v3432_v45 = vld [vmem:[%s5233_s0 + $0x460] sm:$0xff] }
 0x119   :  { %v2160_v58 = vld [vmem:[%s5233_s0 + $0x1c0] sm:$0xff] }
 0x1d6   :  { %v1156_v19 = vpop.f32.mrf.mxu0 }
 0x1d7   :  { %v1160_v34 = vmax.f32 %v1156_v19, 0.0  ;;  %v2161_v19 = vld [vmem:[%s5233_s0 + $0x1e0] sm:$0xff] }
 0x1d8   :  { %v2118_v11 = vpop.f32.mrf.mxu0 }
 0x1d9   :  { %2152 = vmatmul.mubr.msk.f32.vlgmr.msra.gmra.mxu1 %vm1161_vm1, %v1160_v34  ;;  %v1325_v11 = vld [vmem:[%s5233_s0 + $0x480] sm:$0xff] }
 0x299   :  { %v1279_v16 = vpop.f32.mrf.mxu1 }
 0x29a   :  { %v2094_v18 = vmul.f32 -1.442695, %v1279_v16  ;;  %v1326_v16 = vld [vmem:[%s5233_s0 + $0x4a0] sm:$0xff] }
 0x29b   :  { %v2153_v10 = vpop.f32.mrf.mxu1 }
 0x29c   :  { %2156 = vpow2.f32 %v2094_v18  ;;  %v1327_v18 = vld [vmem:[%s5233_s0 + $0x4c0] sm:$0xff] }
 0x2a9   :  { %v2157_v44 = vpop.eup %2156 }
 0x2aa   :  { %v1286_v8 = vadd.f32 1.0, %v2157_v44 }
 0x2ac   :  { %2158 = vrcp.f32 %v1286_v8 }
 0x2b9   :  { %v2159_v47 = vpop.eup %2158 }
 0x2ba   :  { %v3343_v40 = vrot.slane %v2159_v47, %v1355_v21  ;;  %v3357_v29 = vrot.slane %v2159_v47, %v1551_v25  ;;  %v3359_v46 = vrot.slane %v2159_v47, %v1747_v26  ;;  %v3361_v48 = vrot.slane %v2159_v47, %v1943_v27 }
 0x2bc   :  { %v1357_v53 = vmul.f32 %v3343_v40, %v1289_v22  ;;  %v1358_v32 = vmul.f32 %v3343_v40, %v1290_v23  ;;  %v1359_v33 = vmul.f32 %v3343_v40, %v1291_v0  ;;  %v1360_v55 = vmul.f32 %v3343_v40, %v1292_v24  ;;  %v1328_v22 = vld [vmem:[%s5233_s0 + $0x4e0] sm:$0xff] }
 0x2bd   :  { %v1361_v30 = vmul.f32 %v3343_v40, %v1293_v63  ;;  %v1362_v41 = vmul.f32 %v3343_v40, %v1294_v4  ;;  %v1363_v61 = vmul.f32 %v3343_v40, %v1295_v36  ;;  %v1364_v62 = vmul.f32 %v3343_v40, %v1296_v39  ;;  %v1329_v23 = vld [vmem:[%s5233_s0 + $0x500] sm:$0xff] }
 0x2be   :  { %v1365_v35 = vmul.f32 %v3343_v40, %v1297_v2  ;;  %v1366_v12 = vmul.f32 %v3343_v40, %v1298_v38  ;;  %v1367_v14 = vmul.f32 %v3343_v40, %v1299_v13  ;;  %v1368_v54 = vmul.f32 %v3343_v40, %v1300_v49  ;;  %1421 = vst [vmem:[%s5236_s3] sm:$0xff] %v1357_v53  ;;  %v1330_v0 = vld [vmem:[%s5233_s0 + $0x520] sm:$0xff] }
 0x2bf   :  { %1422 = vst [vmem:[%s5236_s3 + $0x20] sm:$0xff] %v1358_v32  ;;  %1423 = vst [vmem:[%s5236_s3 + $0x40] sm:$0xff] %v1359_v33  ;;  %v1369_v9 = vmul.f32 %v3343_v40, %v1301_v20  ;;  %v1370_v1 = vmul.f32 %v3343_v40, %v1302_v28  ;;  %v1371_v17 = vmul.f32 %v2160_v58, %v3343_v40  ;;  %v1331_v63 = vld [vmem:[%s5233_s0 + $0x540] sm:$0xff] }
 0x2c0   :  { %1424 = vst [vmem:[%s5236_s3 + $0x60] sm:$0xff] %v1360_v55  ;;  %v1372_v34 = vmul.f32 %v2161_v19, %v3343_v40  ;;  %1425 = vst [vmem:[%s5236_s3 + $0x80] sm:$0xff] %v1361_v30  ;;  %v1373_v10 = vmul.f32 %v3343_v40, %v1305_v42  ;;  %v1374_v44 = vmul.f32 %v3343_v40, %v1306_v15  ;;  %v1332_v4 = vld [vmem:[%s5233_s0 + $0x560] sm:$0xff] }
 0x2c1   :  { %1426 = vst [vmem:[%s5236_s3 + $0xa0] sm:$0xff] %v1362_v41  ;;  %1427 = vst [vmem:[%s5236_s3 + $0xc0] sm:$0xff] %v1363_v61  ;;  %v1375_v8 = vmul.f32 %v3343_v40, %v1307_v43  ;;  %v1376_v21 = vmul.f32 %v3343_v40, %v1308_v60  ;;  %v1377_v24 = vmul.f32 %v3343_v40, %v1309_v6  ;;  %v1333_v36 = vld [vmem:[%s5233_s0 + $0x580] sm:$0xff] }
 0x2c2   :  { %1428 = vst [vmem:[%s5236_s3 + $0xe0] sm:$0xff] %v1364_v62  ;;  %1429 = vst [vmem:[%s5236_s3 + $0x100] sm:$0xff] %v1365_v35  ;;  %v1378_v25 = vmul.f32 %v3343_v40, %v1310_v50  ;;  %v1379_v26 = vmul.f32 %v3343_v40, %v1311_v31  ;;  %v1380_v27 = vmul.f32 %v3343_v40, %v1312_v51  ;;  %v1337_v13 = vld [vmem:[%s5233_s0 + $0x600] sm:$0xff] }
 0x2c3   :  { %1430 = vst [vmem:[%s5236_s3 + $0x120] sm:$0xff] %v1366_v12  ;;  %1431 = vst [vmem:[%s5236_s3 + $0x140] sm:$0xff] %v1367_v14  ;;  %v1381_v39 = vmul.f32 %v3343_v40, %v1313_v57  ;;  %v1382_v47 = vmul.f32 %v3343_v40, %v1314_v59  ;;  %v1383_v2 = vmul.f32 %v3343_v40, %v1315_v3  ;;  %v1338_v49 = vld [vmem:[%s5233_s0 + $0x620] sm:$0xff] }
 0x2c4   :  { %1432 = vst [vmem:[%s5236_s3 + $0x160] sm:$0xff] %v1368_v54  ;;  %1433 = vst [vmem:[%s5236_s3 + $0x180] sm:$0xff] %v1369_v9  ;;  %v1384_v38 = vmul.f32 %v3343_v40, %v1316_v52  ;;  %v1339_v20 = vld [vmem:[%s5233_s0 + $0x640] sm:$0xff]  ;;  %v1385_v28 = vmul.f32 %v3343_v40, %v1317_v5  ;;  %v1389_v33 = vmul.f32 %v3343_v40, %v3417_v56 }
 0x2c5   :  { %1434 = vst [vmem:[%s5236_s3 + $0x1a0] sm:$0xff] %v1370_v1  ;;  %1435 = vst [vmem:[%s5236_s3 + $0x1c0] sm:$0xff] %v1371_v17  ;;  %v2162_v42 = vld [vmem:[%s5233_s0 + $0x3a0] sm:$0xff]  ;;  %v1390_v55 = vmul.f32 %v3343_v40, %v3422_v7  ;;  %v1391_v51 = vmul.f32 %v3343_v40, %v3427_v37  ;;  %v1392_v57 = vmul.f32 %v3343_v40, %v3432_v45 }
 0x2c6   :  { %1436 = vst [vmem:[%s5236_s3 + $0x1e0] sm:$0xff] %v1372_v34  ;;  %1437 = vst [vmem:[%s5236_s3 + $0x200] sm:$0xff] %v1373_v10  ;;  %v1386_v15 = vmul.f32 %v2162_v42, %v3343_v40  ;;  %v2163_v43 = vld [vmem:[%s5233_s0 + $0x3c0] sm:$0xff]  ;;  %v1393_v61 = vmul.f32 %v3343_v40, %v1325_v11  ;;  %v1394_v62 = vmul.f32 %v3343_v40, %v1326_v16  ;;  %v3672_v34 = vld [vmem:[%s5233_s0 + $0x8] sm:$0xff] }
 0x2c7   :  { %1438 = vst [vmem:[%s5236_s3 + $0x220] sm:$0xff] %v1374_v44  ;;  %1439 = vst [vmem:[%s5236_s3 + $0x240] sm:$0xff] %v1375_v8  ;;  %v1387_v60 = vmul.f32 %v2163_v43, %v3343_v40  ;;  %v2164_v6 = vld [vmem:[%s5233_s0 + $0x3e0] sm:$0xff]  ;;  %v1395_v3 = vmul.f32 %v3343_v40, %v1327_v18  ;;  %v1396_v52 = vmul.f32 %v3343_v40, %v1328_v22  ;;  %v3677_v11 = vld [vmem:[%s5233_s0 + $0x28] sm:$0xff] }
 0x2c8   :  { %1440 = vst [vmem:[%s5236_s3 + $0x260] sm:$0xff] %v1376_v21  ;;  %v1388_v50 = vmul.f32 %v2164_v6, %v3343_v40  ;;  %1441 = vst [vmem:[%s5236_s3 + $0x280] sm:$0xff] %v1377_v24  ;;  %v1340_v31 = vld [vmem:[%s5233_s0 + $0x660] sm:$0xff]  ;;  %v1397_v14 = vmul.f32 %v3343_v40, %v1329_v23  ;;  %v1398_v54 = vmul.f32 %v3343_v40, %v1330_v0  ;;  %v3682_v16 = vld [vmem:[%s5233_s0 + $0x48] sm:$0xff] }
 0x2c9   :  { %1442 = vst [vmem:[%s5236_s3 + $0x2a0] sm:$0xff] %v1378_v25  ;;  %1443 = vst [vmem:[%s5236_s3 + $0x2c0] sm:$0xff] %v1379_v26  ;;  %v1341_v53 = vld [vmem:[%s5233_s0 + $0x680] sm:$0xff]  ;;  %v1399_v56 = vmul.f32 %v3343_v40, %v1331_v63  ;;  %v1400_v7 = vmul.f32 %v3343_v40, %v1332_v4  ;;  %v1401_v37 = vmul.f32 %v3343_v40, %v1333_v36  ;;  %v3687_v18 = vld [vmem:[%s5233_s0 + $0x68] sm:$0xff] }
 0x2ca   :  { %1444 = vst [vmem:[%s5236_s3 + $0x2e0] sm:$0xff] %v1380_v27  ;;  %v1342_v32 = vld [vmem:[%s5233_s0 + $0x6a0] sm:$0xff]  ;;  %1445 = vst [vmem:[%s5236_s3 + $0x300] sm:$0xff] %v1381_v39  ;;  %v1405_v10 = vmul.f32 %v3343_v40, %v1337_v13  ;;  %v1406_v44 = vmul.f32 %v3343_v40, %v1338_v49  ;;  %v1407_v8 = vmul.f32 %v3343_v40, %v1339_v20  ;;  %v3708_v22 = vld [vmem:[%s5233_s0 + $0x88] sm:$0xff] }
 0x2cb   :  { %1446 = vst [vmem:[%s5236_s3 + $0x320] sm:$0xff] %v1382_v47  ;;  %1447 = vst [vmem:[%s5236_s3 + $0x340] sm:$0xff] %v1383_v2  ;;  %v1343_v59 = vld [vmem:[%s5233_s0 + $0x6c0] sm:$0xff]  ;;  %v1408_v21 = vmul.f32 %v3343_v40, %v1340_v31  ;;  %v3713_v23 = vld [vmem:[%s5233_s0 + $0xa8] sm:$0xff]  ;;  %v1409_v25 = vmul.f32 %v3343_v40, %v1341_v53  ;;  %v1410_v26 = vmul.f32 %v3343_v40, %v1342_v32 }
 0x2cc   :  { %1448 = vst [vmem:[%s5236_s3 + $0x360] sm:$0xff] %v1384_v38  ;;  %v1344_v30 = vld [vmem:[%s5233_s0 + $0x6e0] sm:$0xff]  ;;  %1449 = vst [vmem:[%s5236_s3 + $0x380] sm:$0xff] %v1385_v28  ;;  %v3718_v0 = vld [vmem:[%s5233_s0 + $0xc8] sm:$0xff]  ;;  %v1411_v27 = vmul.f32 %v3343_v40, %v1343_v59 }
 0x2cd   :  { %v1345_v41 = vld [vmem:[%s5233_s0 + $0x700] sm:$0xff]  ;;  %1450 = vst [vmem:[%s5236_s3 + $0x3a0] sm:$0xff] %v1386_v15  ;;  %1451 = vst [vmem:[%s5236_s3 + $0x3c0] sm:$0xff] %v1387_v60  ;;  %v3723_v24 = vld [vmem:[%s5233_s0 + $0xe8] sm:$0xff]  ;;  %v1412_v63 = vmul.f32 %v3343_v40, %v1344_v30 }
 0x2ce   :  { %1452 = vst [vmem:[%s5236_s3 + $0x3e0] sm:$0xff] %v1388_v50  ;;  %v1346_v5 = vld [vmem:[%s5233_s0 + $0x720] sm:$0xff]  ;;  %1453 = vst [vmem:[%s5236_s3 + $0x400] sm:$0xff] %v1389_v33  ;;  %v1493_v4 = vld [vmem:[%s5233_s0 + $0x108] sm:$0xff]  ;;  %v1413_v2 = vmul.f32 %v3343_v40, %v1345_v41 }
 0x2cf   :  { %v1347_v35 = vld [vmem:[%s5233_s0 + $0x740] sm:$0xff]  ;;  %1454 = vst [vmem:[%s5236_s3 + $0x420] sm:$0xff] %v1390_v55  ;;  %1455 = vst [vmem:[%s5236_s3 + $0x440] sm:$0xff] %v1391_v51  ;;  %v1494_v36 = vld [vmem:[%s5233_s0 + $0x128] sm:$0xff]  ;;  %v1414_v38 = vmul.f32 %v3343_v40, %v1346_v5  ;;  %v1556_v5 = vmul.f32 %v3357_v29, %v3687_v18 }
 0x2d0   :  { %v1348_v12 = vld [vmem:[%s5233_s0 + $0x760] sm:$0xff]  ;;  %1456 = vst [vmem:[%s5236_s3 + $0x460] sm:$0xff] %v1392_v57  ;;  %1457 = vst [vmem:[%s5236_s3 + $0x480] sm:$0xff] %v1393_v61  ;;  %v1495_v39 = vld [vmem:[%s5233_s0 + $0x148] sm:$0xff]  ;;  %v1415_v13 = vmul.f32 %v3343_v40, %v1347_v35 }
 0x2d1   :  { %v2165_v45 = vld [vmem:[%s5233_s0 + $0x5a0] sm:$0xff]  ;;  %1458 = vst [vmem:[%s5236_s3 + $0x4a0] sm:$0xff] %v1394_v62  ;;  %1459 = vst [vmem:[%s5236_s3 + $0x4c0] sm:$0xff] %v1395_v3  ;;  %v1496_v47 = vld [vmem:[%s5233_s0 + $0x168] sm:$0xff]  ;;  %v1416_v49 = vmul.f32 %v3343_v40, %v1348_v12  ;;  %v1553_v62 = vmul.f32 %v3357_v29, %v3672_v34  ;;  %v1554_v3 = vmul.f32 %v3357_v29, %v3677_v11 }
 0x2d2   :  { %v1402_v9 = vmul.f32 %v2165_v45, %v3343_v40  ;;  %v2166_v1 = vld [vmem:[%s5233_s0 + $0x5c0] sm:$0xff]  ;;  %1460 = vst [vmem:[%s5236_s3 + $0x4e0] sm:$0xff] %v1396_v52  ;;  %1461 = vst [vmem:[%s5236_s3 + $0x500] sm:$0xff] %v1397_v14  ;;  %v1497_v20 = vld [vmem:[%s5233_s0 + $0x188] sm:$0xff]  ;;  %v1555_v52 = vmul.f32 %v3357_v29, %v3682_v16  ;;  %v1560_v45 = vmul.f32 %v3357_v29, %v3723_v24 }
 0x2d3   :  { %v1403_v58 = vmul.f32 %v2166_v1, %v3343_v40  ;;  %v2167_v17 = vld [vmem:[%s5233_s0 + $0x5e0] sm:$0xff]  ;;  %1462 = vst [vmem:[%s5236_s3 + $0x520] sm:$0xff] %v1398_v54  ;;  %1463 = vst [vmem:[%s5236_s3 + $0x540] sm:$0xff] %v1399_v56  ;;  %v1498_v28 = vld [vmem:[%s5233_s0 + $0x1a8] sm:$0xff]  ;;  %v1557_v56 = vmul.f32 %v3357_v29, %v3708_v22  ;;  %v1562_v34 = vmul.f32 %v3357_v29, %v1494_v36 }
 0x2d4   :  { %v1404_v19 = vmul.f32 %v2167_v17, %v3343_v40  ;;  %1464 = vst [vmem:[%s5236_s3 + $0x560] sm:$0xff] %v1400_v7  ;;  %1465 = vst [vmem:[%s5236_s3 + $0x580] sm:$0xff] %v1401_v37  ;;  %v1499_v42 = vld [vmem:[%s5233_s0 + $0x1c8] sm:$0xff]  ;;  %v2168_v43 = vld [vmem:[%s5233_s0 + $0x780] sm:$0xff]  ;;  %v1558_v7 = vmul.f32 %v3357_v29, %v3713_v23  ;;  %v1559_v37 = vmul.f32 %v3357_v29, %v3718_v0 }
 0x2d5   :  { %1466 = vst [vmem:[%s5236_s3 + $0x5a0] sm:$0xff] %v1402_v9  ;;  %1467 = vst [vmem:[%s5236_s3 + $0x5c0] sm:$0xff] %v1403_v58  ;;  %v1500_v15 = vld [vmem:[%s5233_s0 + $0x1e8] sm:$0xff]  ;;  %v1417_v60 = vmul.f32 %v2168_v43, %v3343_v40  ;;  %v2169_v6 = vld [vmem:[%s5233_s0 + $0x7a0] sm:$0xff]  ;;  %v1563_v11 = vmul.f32 %v3357_v29, %v1495_v39  ;;  %v1564_v16 = vmul.f32 %v3357_v29, %v1496_v47 }
 0x2d6   :  { %1468 = vst [vmem:[%s5236_s3 + $0x5e0] sm:$0xff] %v1404_v19  ;;  %1469 = vst [vmem:[%s5236_s3 + $0x600] sm:$0xff] %v1405_v10  ;;  %v1418_v50 = vmul.f32 %v2169_v6, %v3343_v40  ;;  %v2170_v31 = vld [vmem:[%s5233_s0 + $0x7c0] sm:$0xff]  ;;  %v1502_v55 = vld [vmem:[%s5233_s0 + $0x228] sm:$0xff]  ;;  %v1561_v19 = vmul.f32 %v3357_v29, %v1493_v4  ;;  %v1566_v22 = vmul.f32 %v3357_v29, %v1498_v28 }
 0x2d7   :  { %1470 = vst [vmem:[%s5236_s3 + $0x620] sm:$0xff] %v1406_v44  ;;  %1471 = vst [vmem:[%s5236_s3 + $0x640] sm:$0xff] %v1407_v8  ;;  %v1419_v53 = vmul.f32 %v2170_v31, %v3343_v40  ;;  %v2171_v32 = vld [vmem:[%s5233_s0 + $0x7e0] sm:$0xff]  ;;  %v1503_v51 = vld [vmem:[%s5233_s0 + $0x248] sm:$0xff]  ;;  %v1567_v23 = vmul.f32 %v3357_v29, %v1499_v42  ;;  %v1568_v0 = vmul.f32 %v3357_v29, %v1500_v15 }
 0x2d8   :  { %1472 = vst [vmem:[%s5236_s3 + $0x660] sm:$0xff] %v1408_v21  ;;  %v1420_v33 = vmul.f32 %v2171_v32, %v3343_v40  ;;  %1473 = vst [vmem:[%s5236_s3 + $0x680] sm:$0xff] %v1409_v25  ;;  %v1501_v40 = vld [vmem:[%s5233_s0 + $0x208] sm:$0xff]  ;;  %v1565_v21 = vmul.f32 %v3357_v29, %v1497_v20  ;;  %v1570_v4 = vmul.f32 %v3357_v29, %v1502_v55 }
 0x2d9   :  { %1474 = vst [vmem:[%s5236_s3 + $0x6a0] sm:$0xff] %v1410_v26  ;;  %1475 = vst [vmem:[%s5236_s3 + $0x6c0] sm:$0xff] %v1411_v27  ;;  %v1504_v57 = vld [vmem:[%s5233_s0 + $0x268] sm:$0xff]  ;;  %v1571_v36 = vmul.f32 %v3357_v29, %v1503_v51 }
 0x2da   :  { %1476 = vst [vmem:[%s5236_s3 + $0x6e0] sm:$0xff] %v1412_v63  ;;  %1477 = vst [vmem:[%s5236_s3 + $0x700] sm:$0xff] %v1413_v2  ;;  %v1505_v59 = vld [vmem:[%s5233_s0 + $0x288] sm:$0xff]  ;;  %v1569_v63 = vmul.f32 %v3357_v29, %v1501_v40  ;;  %v1572_v39 = vmul.f32 %v3357_v29, %v1504_v57 }
 0x2db   :  { %1478 = vst [vmem:[%s5236_s3 + $0x720] sm:$0xff] %v1414_v38  ;;  %1479 = vst [vmem:[%s5236_s3 + $0x740] sm:$0xff] %v1415_v13  ;;  %v1506_v30 = vld [vmem:[%s5233_s0 + $0x2a8] sm:$0xff] }
 0x2dc   :  { %1480 = vst [vmem:[%s5236_s3 + $0x760] sm:$0xff] %v1416_v49  ;;  %v1507_v41 = vld [vmem:[%s5233_s0 + $0x2c8] sm:$0xff]  ;;  %1481 = vst [vmem:[%s5236_s3 + $0x780] sm:$0xff] %v1417_v60  ;;  %v1573_v49 = vmul.f32 %v3357_v29, %v1505_v59  ;;  %v1574_v20 = vmul.f32 %v3357_v29, %v1506_v30 }
 0x2dd   :  { %v1508_v61 = vld [vmem:[%s5233_s0 + $0x2e8] sm:$0xff]  ;;  %1482 = vst [vmem:[%s5236_s3 + $0x7a0] sm:$0xff] %v1418_v50  ;;  %1483 = vst [vmem:[%s5236_s3 + $0x7c0] sm:$0xff] %v1419_v53  ;;  %v1575_v28 = vmul.f32 %v3357_v29, %v1507_v41 }
 0x2de   :  { %1484 = vst [vmem:[%s5236_s3 + $0x7e0] sm:$0xff] %v1420_v33  ;;  %v1509_v35 = vld [vmem:[%s5233_s0 + $0x308] sm:$0xff]  ;;  %1617 = vst [vmem:[%s5236_s3 + $0x8] sm:$0xff] %v1553_v62  ;;  %v1576_v42 = vmul.f32 %v3357_v29, %v1508_v61 }
 0x2df   :  { %v1510_v12 = vld [vmem:[%s5233_s0 + $0x328] sm:$0xff]  ;;  %1618 = vst [vmem:[%s5236_s3 + $0x28] sm:$0xff] %v1554_v3  ;;  %1619 = vst [vmem:[%s5236_s3 + $0x48] sm:$0xff] %v1555_v52  ;;  %v1577_v50 = vmul.f32 %v3357_v29, %v1509_v35 }
 0x2e0   :  { %v1511_v14 = vld [vmem:[%s5233_s0 + $0x348] sm:$0xff]  ;;  %1620 = vst [vmem:[%s5236_s3 + $0x68] sm:$0xff] %v1556_v5  ;;  %1621 = vst [vmem:[%s5236_s3 + $0x88] sm:$0xff] %v1557_v56  ;;  %v1578_v31 = vmul.f32 %v3357_v29, %v1510_v12 }
 0x2e1   :  { %v1512_v54 = vld [vmem:[%s5233_s0 + $0x368] sm:$0xff]  ;;  %1622 = vst [vmem:[%s5236_s3 + $0xa8] sm:$0xff] %v1558_v7  ;;  %1623 = vst [vmem:[%s5236_s3 + $0xc8] sm:$0xff] %v1559_v37  ;;  %v1579_v53 = vmul.f32 %v3357_v29, %v1511_v14 }
 0x2e2   :  { %v3888_v9 = vld [vmem:[%s5233_s0 + $0x388] sm:$0xff]  ;;  %1624 = vst [vmem:[%s5236_s3 + $0xe8] sm:$0xff] %v1560_v45  ;;  %1625 = vst [vmem:[%s5236_s3 + $0x108] sm:$0xff] %v1561_v19  ;;  %v1580_v32 = vmul.f32 %v3357_v29, %v1512_v54 }
 0x2e3   :  { %v3893_v1 = vld [vmem:[%s5233_s0 + $0x3a8] sm:$0xff]  ;;  %1626 = vst [vmem:[%s5236_s3 + $0x128] sm:$0xff] %v1562_v34  ;;  %1627 = vst [vmem:[%s5236_s3 + $0x148] sm:$0xff] %v1563_v11  ;;  %v1581_v57 = vmul.f32 %v3357_v29, %v3888_v9 }
 0x2e4   :  { %v3898_v58 = vld [vmem:[%s5233_s0 + $0x3c8] sm:$0xff]  ;;  %1628 = vst [vmem:[%s5236_s3 + $0x168] sm:$0xff] %v1564_v16  ;;  %1629 = vst [vmem:[%s5236_s3 + $0x188] sm:$0xff] %v1565_v21  ;;  %v1582_v59 = vmul.f32 %v3357_v29, %v3893_v1 }
 0x2e5   :  { %v3903_v17 = vld [vmem:[%s5233_s0 + $0x3e8] sm:$0xff]  ;;  %1630 = vst [vmem:[%s5236_s3 + $0x1a8] sm:$0xff] %v1566_v22  ;;  %1631 = vst [vmem:[%s5236_s3 + $0x1c8] sm:$0xff] %v1567_v23  ;;  %v1583_v30 = vmul.f32 %v3357_v29, %v3898_v58 }
 0x2e6   :  { %v3924_v18 = vld [vmem:[%s5233_s0 + $0x408] sm:$0xff]  ;;  %1632 = vst [vmem:[%s5236_s3 + $0x1e8] sm:$0xff] %v1568_v0  ;;  %1633 = vst [vmem:[%s5236_s3 + $0x208] sm:$0xff] %v1569_v63  ;;  %v1584_v41 = vmul.f32 %v3357_v29, %v3903_v17  ;;  %v1681_v0 = vld [vmem:[%s5233_s0 + $0x10] sm:$0xff] }
 0x2e7   :  { %v3929_v10 = vld [vmem:[%s5233_s0 + $0x428] sm:$0xff]  ;;  %1634 = vst [vmem:[%s5236_s3 + $0x228] sm:$0xff] %v1570_v4  ;;  %1635 = vst [vmem:[%s5236_s3 + $0x248] sm:$0xff] %v1571_v36  ;;  %v1585_v5 = vmul.f32 %v3357_v29, %v3924_v18 }
 0x2e8   :  { %v3934_v44 = vld [vmem:[%s5233_s0 + $0x448] sm:$0xff]  ;;  %1636 = vst [vmem:[%s5236_s3 + $0x268] sm:$0xff] %v1572_v39  ;;  %1637 = vst [vmem:[%s5236_s3 + $0x288] sm:$0xff] %v1573_v49  ;;  %v1586_v35 = vmul.f32 %v3357_v29, %v3929_v10  ;;  %v1685_v39 = vld [vmem:[%s5233_s0 + $0x90] sm:$0xff] }
 0x2e9   :  { %v3939_v8 = vld [vmem:[%s5233_s0 + $0x468] sm:$0xff]  ;;  %1638 = vst [vmem:[%s5236_s3 + $0x2a8] sm:$0xff] %v1574_v20  ;;  %1639 = vst [vmem:[%s5236_s3 + $0x2c8] sm:$0xff] %v1575_v28  ;;  %v1587_v12 = vmul.f32 %v3357_v29, %v3934_v44 }
 0x2ea   :  { %v3960_v24 = vld [vmem:[%s5233_s0 + $0x488] sm:$0xff]  ;;  %1640 = vst [vmem:[%s5236_s3 + $0x2e8] sm:$0xff] %v1576_v42  ;;  %v1588_v14 = vmul.f32 %v3357_v29, %v3939_v8  ;;  %1641 = vst [vmem:[%s5236_s3 + $0x308] sm:$0xff] %v1577_v50  ;;  %v1689_v42 = vld [vmem:[%s5233_s0 + $0x110] sm:$0xff] }
 0x2eb   :  { %v3965_v25 = vld [vmem:[%s5233_s0 + $0x4a8] sm:$0xff]  ;;  %1642 = vst [vmem:[%s5236_s3 + $0x328] sm:$0xff] %v1578_v31  ;;  %1643 = vst [vmem:[%s5236_s3 + $0x348] sm:$0xff] %v1579_v53  ;;  %v1589_v45 = vmul.f32 %v3357_v29, %v3960_v24  ;;  %v1682_v24 = vld [vmem:[%s5233_s0 + $0x30] sm:$0xff] }
 0x2ec   :  { %v3970_v26 = vld [vmem:[%s5233_s0 + $0x4c8] sm:$0xff]  ;;  %1644 = vst [vmem:[%s5236_s3 + $0x368] sm:$0xff] %v1580_v32  ;;  %v1590_v9 = vmul.f32 %v3357_v29, %v3965_v25  ;;  %1645 = vst [vmem:[%s5236_s3 + $0x388] sm:$0xff] %v1581_v57  ;;  %v1683_v25 = vld [vmem:[%s5233_s0 + $0x50] sm:$0xff] }
 0x2ed   :  { %v3975_v27 = vld [vmem:[%s5233_s0 + $0x4e8] sm:$0xff]  ;;  %v1591_v1 = vmul.f32 %v3357_v29, %v3970_v26  ;;  %1646 = vst [vmem:[%s5236_s3 + $0x3a8] sm:$0xff] %v1582_v59  ;;  %1647 = vst [vmem:[%s5236_s3 + $0x3c8] sm:$0xff] %v1583_v30  ;;  %v1684_v26 = vld [vmem:[%s5233_s0 + $0x70] sm:$0xff] }
 0x2ee   :  { %v3996_v47 = vld [vmem:[%s5233_s0 + $0x508] sm:$0xff]  ;;  %v1592_v58 = vmul.f32 %v3357_v29, %v3975_v27  ;;  %1648 = vst [vmem:[%s5236_s3 + $0x3e8] sm:$0xff] %v1584_v41  ;;  %1649 = vst [vmem:[%s5236_s3 + $0x408] sm:$0xff] %v1585_v5  ;;  %v1693_v32 = vld [vmem:[%s5233_s0 + $0x190] sm:$0xff] }
 0x2ef   :  { %v4001_v2 = vld [vmem:[%s5233_s0 + $0x528] sm:$0xff]  ;;  %v1593_v16 = vmul.f32 %v3357_v29, %v3996_v47  ;;  %1650 = vst [vmem:[%s5236_s3 + $0x428] sm:$0xff] %v1586_v35  ;;  %1651 = vst [vmem:[%s5236_s3 + $0x448] sm:$0xff] %v1587_v12  ;;  %v1686_v47 = vld [vmem:[%s5233_s0 + $0xb0] sm:$0xff]  ;;  %v1749_v12 = vmul.f32 %v3359_v46, %v1681_v0 }
 0x2f0   :  { %v4006_v38 = vld [vmem:[%s5233_s0 + $0x548] sm:$0xff]  ;;  %v1594_v18 = vmul.f32 %v3357_v29, %v4001_v2  ;;  %1652 = vst [vmem:[%s5236_s3 + $0x468] sm:$0xff] %v1588_v14  ;;  %1653 = vst [vmem:[%s5236_s3 + $0x488] sm:$0xff] %v1589_v45  ;;  %v1687_v2 = vld [vmem:[%s5233_s0 + $0xd0] sm:$0xff]  ;;  %v1750_v14 = vmul.f32 %v3359_v46, %v1682_v24 }
 0x2f1   :  { %v4011_v13 = vld [vmem:[%s5233_s0 + $0x568] sm:$0xff]  ;;  %v1595_v10 = vmul.f32 %v3357_v29, %v4006_v38  ;;  %1654 = vst [vmem:[%s5236_s3 + $0x4a8] sm:$0xff] %v1590_v9  ;;  %1655 = vst [vmem:[%s5236_s3 + $0x4c8] sm:$0xff] %v1591_v1  ;;  %v1688_v38 = vld [vmem:[%s5233_s0 + $0xf0] sm:$0xff]  ;;  %v1753_v1 = vmul.f32 %v3359_v46, %v1685_v39 }
 0x2f2   :  { %v1529_v15 = vld [vmem:[%s5233_s0 + $0x588] sm:$0xff]  ;;  %v1596_v44 = vmul.f32 %v3357_v29, %v4011_v13  ;;  %1656 = vst [vmem:[%s5236_s3 + $0x4e8] sm:$0xff] %v1592_v58  ;;  %1657 = vst [vmem:[%s5236_s3 + $0x508] sm:$0xff] %v1593_v16  ;;  %v1698_v41 = vld [vmem:[%s5233_s0 + $0x230] sm:$0xff]  ;;  %v1754_v58 = vmul.f32 %v3359_v46, %v1686_v47 }
 0x2f3   :  { %v1530_v43 = vld [vmem:[%s5233_s0 + $0x5a8] sm:$0xff]  ;;  %v1597_v8 = vmul.f32 %v3357_v29, %v1529_v15  ;;  %1658 = vst [vmem:[%s5236_s3 + $0x528] sm:$0xff] %v1594_v18  ;;  %1659 = vst [vmem:[%s5236_s3 + $0x548] sm:$0xff] %v1595_v10  ;;  %v1690_v15 = vld [vmem:[%s5233_s0 + $0x130] sm:$0xff]  ;;  %v1757_v10 = vmul.f32 %v3359_v46, %v1689_v42 }
 0x2f4   :  { %v1531_v60 = vld [vmem:[%s5233_s0 + $0x5c8] sm:$0xff]  ;;  %v1598_v21 = vmul.f32 %v3357_v29, %v1530_v43  ;;  %1660 = vst [vmem:[%s5236_s3 + $0x568] sm:$0xff] %v1596_v44  ;;  %v1691_v43 = vld [vmem:[%s5233_s0 + $0x150] sm:$0xff]  ;;  %v1758_v44 = vmul.f32 %v3359_v46, %v1690_v15  ;;  %1813 = vst [vmem:[%s5236_s3 + $0x10] sm:$0xff] %v1749_v12 }
 0x2f5   :  { %v1532_v6 = vld [vmem:[%s5233_s0 + $0x5e8] sm:$0xff]  ;;  %v1599_v22 = vmul.f32 %v3357_v29, %v1531_v60  ;;  %1661 = vst [vmem:[%s5236_s3 + $0x588] sm:$0xff] %v1597_v8  ;;  %v1692_v60 = vld [vmem:[%s5233_s0 + $0x170] sm:$0xff]  ;;  %v1759_v8 = vmul.f32 %v3359_v46, %v1691_v43  ;;  %1814 = vst [vmem:[%s5236_s3 + $0x30] sm:$0xff] %v1750_v14 }
 0x2f6   :  { %v1533_v33 = vld [vmem:[%s5233_s0 + $0x608] sm:$0xff]  ;;  %v1600_v23 = vmul.f32 %v3357_v29, %v1532_v6  ;;  %1662 = vst [vmem:[%s5236_s3 + $0x5a8] sm:$0xff] %v1598_v21  ;;  %v1703_v5 = vld [vmem:[%s5233_s0 + $0x2d0] sm:$0xff]  ;;  %v1760_v21 = vmul.f32 %v3359_v46, %v1692_v60  ;;  %1817 = vst [vmem:[%s5236_s3 + $0x90] sm:$0xff] %v1753_v1 }
 0x2f7   :  { %v1534_v40 = vld [vmem:[%s5233_s0 + $0x628] sm:$0xff]  ;;  %v1601_v27 = vmul.f32 %v3357_v29, %v1533_v33  ;;  %1663 = vst [vmem:[%s5236_s3 + $0x5c8] sm:$0xff] %v1599_v22  ;;  %v1694_v33 = vld [vmem:[%s5233_s0 + $0x1b0] sm:$0xff]  ;;  %1818 = vst [vmem:[%s5236_s3 + $0xb0] sm:$0xff] %v1754_v58 }
 0x2f8   :  { %v1535_v55 = vld [vmem:[%s5233_s0 + $0x648] sm:$0xff]  ;;  %v1602_v63 = vmul.f32 %v3357_v29, %v1534_v40  ;;  %1664 = vst [vmem:[%s5236_s3 + $0x5e8] sm:$0xff] %v1600_v23  ;;  %v1695_v40 = vld [vmem:[%s5233_s0 + $0x1d0] sm:$0xff]  ;;  %1821 = vst [vmem:[%s5236_s3 + $0x110] sm:$0xff] %v1757_v10 }
 0x2f9   :  { %v1536_v51 = vld [vmem:[%s5233_s0 + $0x668] sm:$0xff]  ;;  %v1603_v4 = vmul.f32 %v3357_v29, %v1535_v55  ;;  %1665 = vst [vmem:[%s5236_s3 + $0x608] sm:$0xff] %v1601_v27  ;;  %v1696_v55 = vld [vmem:[%s5233_s0 + $0x1f0] sm:$0xff]  ;;  %v1763_v27 = vmul.f32 %v3359_v46, %v1695_v40  ;;  %1822 = vst [vmem:[%s5236_s3 + $0x130] sm:$0xff] %v1758_v44 }
 0x2fa   :  { %v1537_v61 = vld [vmem:[%s5233_s0 + $0x688] sm:$0xff]  ;;  %v1604_v36 = vmul.f32 %v3357_v29, %v1536_v51  ;;  %1666 = vst [vmem:[%s5236_s3 + $0x628] sm:$0xff] %v1602_v63  ;;  %v1704_v35 = vld [vmem:[%s5233_s0 + $0x2f0] sm:$0xff]  ;;  %v1764_v63 = vmul.f32 %v3359_v46, %v1696_v55  ;;  %1823 = vst [vmem:[%s5236_s3 + $0x150] sm:$0xff] %v1759_v8 }
 0x2fb   :  { %v1538_v62 = vld [vmem:[%s5233_s0 + $0x6a8] sm:$0xff]  ;;  %v1605_v13 = vmul.f32 %v3357_v29, %v1537_v61  ;;  %1667 = vst [vmem:[%s5236_s3 + $0x648] sm:$0xff] %v1603_v4  ;;  %v1699_v61 = vld [vmem:[%s5233_s0 + $0x250] sm:$0xff]  ;;  %1824 = vst [vmem:[%s5236_s3 + $0x170] sm:$0xff] %v1760_v21 }
 0x2fc   :  { %v1539_v3 = vld [vmem:[%s5233_s0 + $0x6c8] sm:$0xff]  ;;  %v1606_v49 = vmul.f32 %v3357_v29, %v1538_v62  ;;  %1668 = vst [vmem:[%s5236_s3 + $0x668] sm:$0xff] %v1604_v36  ;;  %v1700_v62 = vld [vmem:[%s5233_s0 + $0x270] sm:$0xff]  ;;  %1827 = vst [vmem:[%s5236_s3 + $0x1d0] sm:$0xff] %v1763_v27 }
 0x2fd   :  { %v1540_v52 = vld [vmem:[%s5233_s0 + $0x6e8] sm:$0xff]  ;;  %v1607_v20 = vmul.f32 %v3357_v29, %v1539_v3  ;;  %1669 = vst [vmem:[%s5236_s3 + $0x688] sm:$0xff] %v1605_v13  ;;  %v1701_v3 = vld [vmem:[%s5233_s0 + $0x290] sm:$0xff]  ;;  %v1767_v13 = vmul.f32 %v3359_v46, %v1699_v61  ;;  %1828 = vst [vmem:[%s5236_s3 + $0x1f0] sm:$0xff] %v1764_v63 }
 0x2fe   :  { %v1541_v54 = vld [vmem:[%s5233_s0 + $0x708] sm:$0xff]  ;;  %v1608_v28 = vmul.f32 %v3357_v29, %v1540_v52  ;;  %1670 = vst [vmem:[%s5236_s3 + $0x6a8] sm:$0xff] %v1606_v49  ;;  %v1702_v52 = vld [vmem:[%s5233_s0 + $0x2b0] sm:$0xff]  ;;  %v1768_v49 = vmul.f32 %v3359_v46, %v1700_v62  ;;  %v1769_v43 = vmul.f32 %v3359_v46, %v1701_v3  ;;  %v1877_v27 = vld [vmem:[%s5233_s0 + $0x18] sm:$0xff] }
 0x2ff   :  { %v1542_v56 = vld [vmem:[%s5233_s0 + $0x728] sm:$0xff]  ;;  %v1609_v6 = vmul.f32 %v3357_v29, %v1541_v54  ;;  %1671 = vst [vmem:[%s5236_s3 + $0x6c8] sm:$0xff] %v1607_v20  ;;  %v1751_v54 = vmul.f32 %v3359_v46, %v1683_v25  ;;  %v1707_v45 = vld [vmem:[%s5233_s0 + $0x350] sm:$0xff]  ;;  %v1761_v25 = vmul.f32 %v3359_v46, %v1693_v32  ;;  %v1770_v60 = vmul.f32 %v3359_v46, %v1702_v52  ;;  %v1878_v63 = vld [vmem:[%s5233_s0 + $0x38] sm:$0xff] }
 0x300   :  { %v1543_v7 = vld [vmem:[%s5233_s0 + $0x748] sm:$0xff]  ;;  %v1610_v50 = vmul.f32 %v3357_v29, %v1542_v56  ;;  %1672 = vst [vmem:[%s5236_s3 + $0x6e8] sm:$0xff] %v1608_v28  ;;  %v1752_v56 = vmul.f32 %v3359_v46, %v1684_v26  ;;  %v1708_v9 = vld [vmem:[%s5233_s0 + $0x370] sm:$0xff]  ;;  %v1762_v26 = vmul.f32 %v3359_v46, %v1694_v33  ;;  %1831 = vst [vmem:[%s5236_s3 + $0x250] sm:$0xff] %v1767_v13 }
 0x301   :  { %v1544_v37 = vld [vmem:[%s5233_s0 + $0x768] sm:$0xff]  ;;  %v1611_v31 = vmul.f32 %v3357_v29, %v1543_v7  ;;  %1673 = vst [vmem:[%s5236_s3 + $0x708] sm:$0xff] %v1609_v6  ;;  %v1705_v7 = vld [vmem:[%s5233_s0 + $0x310] sm:$0xff]  ;;  %1815 = vst [vmem:[%s5236_s3 + $0x50] sm:$0xff] %v1751_v54  ;;  %v1771_v6 = vmul.f32 %v3359_v46, %v1703_v5 }
 0x302   :  { %v1545_v17 = vld [vmem:[%s5233_s0 + $0x788] sm:$0xff]  ;;  %v1612_v53 = vmul.f32 %v3357_v29, %v1544_v37  ;;  %1674 = vst [vmem:[%s5236_s3 + $0x728] sm:$0xff] %v1610_v50  ;;  %v1706_v37 = vld [vmem:[%s5233_s0 + $0x330] sm:$0xff]  ;;  %1816 = vst [vmem:[%s5236_s3 + $0x70] sm:$0xff] %v1752_v56  ;;  %v1772_v50 = vmul.f32 %v3359_v46, %v1704_v35  ;;  %v1773_v40 = vmul.f32 %v3359_v46, %v1705_v7 }
 0x303   :  { %v1546_v19 = vld [vmem:[%s5233_s0 + $0x7a8] sm:$0xff]  ;;  %v1613_v51 = vmul.f32 %v3357_v29, %v1545_v17  ;;  %1675 = vst [vmem:[%s5236_s3 + $0x748] sm:$0xff] %v1611_v31  ;;  %v1755_v17 = vmul.f32 %v3359_v46, %v1687_v2  ;;  %v4394_v16 = vld [vmem:[%s5233_s0 + $0x3d0] sm:$0xff]  ;;  %1825 = vst [vmem:[%s5236_s3 + $0x190] sm:$0xff] %v1761_v25  ;;  %v1774_v55 = vmul.f32 %v3359_v46, %v1706_v37 }
 0x304   :  { %v1547_v34 = vld [vmem:[%s5233_s0 + $0x7c8] sm:$0xff]  ;;  %v1614_v57 = vmul.f32 %v3357_v29, %v1546_v19  ;;  %1676 = vst [vmem:[%s5236_s3 + $0x768] sm:$0xff] %v1612_v53  ;;  %v1756_v19 = vmul.f32 %v3359_v46, %v1688_v38  ;;  %v4399_v18 = vld [vmem:[%s5233_s0 + $0x3f0] sm:$0xff]  ;;  %v1766_v38 = vmul.f32 %v3359_v46, %v1698_v41  ;;  %1826 = vst [vmem:[%s5236_s3 + $0x1b0] sm:$0xff] %v1762_v26 }
 0x305   :  { %v1548_v11 = vld [vmem:[%s5233_s0 + $0x7e8] sm:$0xff]  ;;  %v1615_v59 = vmul.f32 %v3357_v29, %v1547_v34  ;;  %1677 = vst [vmem:[%s5236_s3 + $0x788] sm:$0xff] %v1613_v51  ;;  %v4384_v34 = vld [vmem:[%s5233_s0 + $0x390] sm:$0xff]  ;;  %1819 = vst [vmem:[%s5236_s3 + $0xd0] sm:$0xff] %v1755_v17  ;;  %v1775_v51 = vmul.f32 %v3359_v46, %v1707_v45  ;;  %v1779_v3 = vmul.f32 %v3359_v46, %v4394_v16 }
 0x306   :  { %v1616_v30 = vmul.f32 %v3357_v29, %v1548_v11  ;;  %v1697_v29 = vld [vmem:[%s5233_s0 + $0x210] sm:$0xff]  ;;  %1678 = vst [vmem:[%s5236_s3 + $0x7a8] sm:$0xff] %v1614_v57  ;;  %1820 = vst [vmem:[%s5236_s3 + $0xf0] sm:$0xff] %v1756_v19  ;;  %v1776_v57 = vmul.f32 %v3359_v46, %v1708_v9  ;;  %v1777_v61 = vmul.f32 %v3359_v46, %v4384_v34  ;;  %v1881_v13 = vld [vmem:[%s5233_s0 + $0x98] sm:$0xff] }
 0x307   :  { %1679 = vst [vmem:[%s5236_s3 + $0x7c8] sm:$0xff] %v1615_v59  ;;  %v4389_v11 = vld [vmem:[%s5233_s0 + $0x3b0] sm:$0xff]  ;;  %v1765_v2 = vmul.f32 %v3359_v46, %v1697_v29  ;;  %1830 = vst [vmem:[%s5236_s3 + $0x230] sm:$0xff] %v1766_v38  ;;  %v1780_v52 = vmul.f32 %v3359_v46, %v4399_v18 }
 0x308   :  { %1680 = vst [vmem:[%s5236_s3 + $0x7e8] sm:$0xff] %v1616_v30  ;;  %v4420_v22 = vld [vmem:[%s5233_s0 + $0x410] sm:$0xff]  ;;  %1832 = vst [vmem:[%s5236_s3 + $0x270] sm:$0xff] %v1768_v49  ;;  %v1778_v62 = vmul.f32 %v3359_v46, %v4389_v11  ;;  %v1882_v49 = vld [vmem:[%s5233_s0 + $0xb8] sm:$0xff] }
 0x309   :  { %v4425_v23 = vld [vmem:[%s5233_s0 + $0x430] sm:$0xff]  ;;  %1829 = vst [vmem:[%s5236_s3 + $0x210] sm:$0xff] %v1765_v2  ;;  %1833 = vst [vmem:[%s5236_s3 + $0x290] sm:$0xff] %v1769_v43  ;;  %v1781_v54 = vmul.f32 %v3359_v46, %v4420_v22 }
 0x30a   :  { %v4430_v0 = vld [vmem:[%s5233_s0 + $0x450] sm:$0xff]  ;;  %1834 = vst [vmem:[%s5236_s3 + $0x2b0] sm:$0xff] %v1770_v60  ;;  %1835 = vst [vmem:[%s5236_s3 + $0x2d0] sm:$0xff] %v1771_v6  ;;  %v1782_v56 = vmul.f32 %v3359_v46, %v4425_v23  ;;  %v1885_v6 = vld [vmem:[%s5233_s0 + $0x118] sm:$0xff] }
 0x30b   :  { %v4435_v24 = vld [vmem:[%s5233_s0 + $0x470] sm:$0xff]  ;;  %1836 = vst [vmem:[%s5236_s3 + $0x2f0] sm:$0xff] %v1772_v50  ;;  %v1783_v7 = vmul.f32 %v3359_v46, %v4430_v0  ;;  %1837 = vst [vmem:[%s5236_s3 + $0x310] sm:$0xff] %v1773_v40  ;;  %v1886_v50 = vld [vmem:[%s5233_s0 + $0x138] sm:$0xff] }
 0x30c   :  { %v4456_v4 = vld [vmem:[%s5233_s0 + $0x490] sm:$0xff]  ;;  %v1784_v37 = vmul.f32 %v3359_v46, %v4435_v24  ;;  %1838 = vst [vmem:[%s5236_s3 + $0x330] sm:$0xff] %v1774_v55  ;;  %1839 = vst [vmem:[%s5236_s3 + $0x350] sm:$0xff] %v1775_v51  ;;  %v1889_v51 = vld [vmem:[%s5233_s0 + $0x198] sm:$0xff] }
 0x30d   :  { %v4461_v36 = vld [vmem:[%s5233_s0 + $0x4b0] sm:$0xff]  ;;  %1840 = vst [vmem:[%s5236_s3 + $0x370] sm:$0xff] %v1776_v57  ;;  %v1785_v17 = vmul.f32 %v3359_v46, %v4456_v4  ;;  %1841 = vst [vmem:[%s5236_s3 + $0x390] sm:$0xff] %v1777_v61  ;;  %v1879_v4 = vld [vmem:[%s5233_s0 + $0x58] sm:$0xff] }
 0x30e   :  { %v4466_v39 = vld [vmem:[%s5233_s0 + $0x4d0] sm:$0xff]  ;;  %v1786_v19 = vmul.f32 %v3359_v46, %v4461_v36  ;;  %1842 = vst [vmem:[%s5236_s3 + $0x3b0] sm:$0xff] %v1778_v62  ;;  %1843 = vst [vmem:[%s5236_s3 + $0x3d0] sm:$0xff] %v1779_v3  ;;  %v1880_v36 = vld [vmem:[%s5233_s0 + $0x78] sm:$0xff] }
 0x30f   :  { %v4471_v47 = vld [vmem:[%s5233_s0 + $0x4f0] sm:$0xff]  ;;  %v1787_v34 = vmul.f32 %v3359_v46, %v4466_v39  ;;  %1844 = vst [vmem:[%s5236_s3 + $0x3f0] sm:$0xff] %v1780_v52  ;;  %1845 = vst [vmem:[%s5236_s3 + $0x410] sm:$0xff] %v1781_v54  ;;  %v1890_v57 = vld [vmem:[%s5233_s0 + $0x1b8] sm:$0xff] }
 0x310   :  { %v4492_v20 = vld [vmem:[%s5233_s0 + $0x510] sm:$0xff]  ;;  %v1788_v11 = vmul.f32 %v3359_v46, %v4471_v47  ;;  %1846 = vst [vmem:[%s5236_s3 + $0x430] sm:$0xff] %v1782_v56  ;;  %1847 = vst [vmem:[%s5236_s3 + $0x450] sm:$0xff] %v1783_v7  ;;  %v1894_v3 = vld [vmem:[%s5233_s0 + $0x238] sm:$0xff]  ;;  %v1945_v56 = vmul.f32 %v3361_v48, %v1877_v27  ;;  %v1946_v7 = vmul.f32 %v3361_v48, %v1878_v63 }
 0x311   :  { %v4497_v28 = vld [vmem:[%s5233_s0 + $0x530] sm:$0xff]  ;;  %v1789_v8 = vmul.f32 %v3359_v46, %v4492_v20  ;;  %1848 = vst [vmem:[%s5236_s3 + $0x470] sm:$0xff] %v1784_v37  ;;  %1849 = vst [vmem:[%s5236_s3 + $0x490] sm:$0xff] %v1785_v17  ;;  %v1883_v20 = vld [vmem:[%s5233_s0 + $0xd8] sm:$0xff]  ;;  %v1947_v37 = vmul.f32 %v3361_v48, %v1879_v4  ;;  %v1957_v63 = vmul.f32 %v3361_v48, %v1889_v51 }
 0x312   :  { %v4502_v42 = vld [vmem:[%s5233_s0 + $0x550] sm:$0xff]  ;;  %v1790_v21 = vmul.f32 %v3359_v46, %v4497_v28  ;;  %1850 = vst [vmem:[%s5236_s3 + $0x4b0] sm:$0xff] %v1786_v19  ;;  %1851 = vst [vmem:[%s5236_s3 + $0x4d0] sm:$0xff] %v1787_v34  ;;  %v1884_v28 = vld [vmem:[%s5233_s0 + $0xf8] sm:$0xff]  ;;  %v1949_v19 = vmul.f32 %v3361_v48, %v1881_v13  ;;  %v1950_v34 = vmul.f32 %v3361_v48, %v1882_v49 }
 0x313   :  { %v4507_v15 = vld [vmem:[%s5233_s0 + $0x570] sm:$0xff]  ;;  %v1791_v22 = vmul.f32 %v3359_v46, %v4502_v42  ;;  %1852 = vst [vmem:[%s5236_s3 + $0x4f0] sm:$0xff] %v1788_v11  ;;  %1853 = vst [vmem:[%s5236_s3 + $0x510] sm:$0xff] %v1789_v8  ;;  %v1895_v52 = vld [vmem:[%s5233_s0 + $0x258] sm:$0xff]  ;;  %v1951_v11 = vmul.f32 %v3361_v48, %v1883_v20  ;;  %v1958_v4 = vmul.f32 %v3361_v48, %v1890_v57 }
 0x314   :  { %v1725_v31 = vld [vmem:[%s5233_s0 + $0x590] sm:$0xff]  ;;  %v1792_v23 = vmul.f32 %v3359_v46, %v4507_v15  ;;  %1854 = vst [vmem:[%s5236_s3 + $0x530] sm:$0xff] %v1790_v21  ;;  %v1900_v54 = vld [vmem:[%s5233_s0 + $0x2f8] sm:$0xff]  ;;  %v1953_v21 = vmul.f32 %v3361_v48, %v1885_v6  ;;  %2009 = vst [vmem:[%s5236_s3 + $0x18] sm:$0xff] %v1945_v56  ;;  %v1962_v20 = vmul.f32 %v3361_v48, %v1894_v3 }
 0x315   :  { %v1726_v53 = vld [vmem:[%s5233_s0 + $0x5b0] sm:$0xff]  ;;  %v1793_v0 = vmul.f32 %v3359_v46, %v1725_v31  ;;  %1855 = vst [vmem:[%s5236_s3 + $0x550] sm:$0xff] %v1791_v22  ;;  %v1887_v31 = vld [vmem:[%s5233_s0 + $0x158] sm:$0xff]  ;;  %v1954_v22 = vmul.f32 %v3361_v48, %v1886_v50  ;;  %2010 = vst [vmem:[%s5236_s3 + $0x38] sm:$0xff] %v1946_v7 }
 0x316   :  { %v1727_v32 = vld [vmem:[%s5233_s0 + $0x5d0] sm:$0xff]  ;;  %v1794_v24 = vmul.f32 %v3359_v46, %v1726_v53  ;;  %1856 = vst [vmem:[%s5236_s3 + $0x570] sm:$0xff] %v1792_v23  ;;  %v1888_v53 = vld [vmem:[%s5233_s0 + $0x178] sm:$0xff]  ;;  %v1955_v23 = vmul.f32 %v3361_v48, %v1887_v31  ;;  %2011 = vst [vmem:[%s5236_s3 + $0x58] sm:$0xff] %v1947_v37 }
 0x317   :  { %v1728_v33 = vld [vmem:[%s5233_s0 + $0x5f0] sm:$0xff]  ;;  %v1795_v25 = vmul.f32 %v3359_v46, %v1727_v32  ;;  %1857 = vst [vmem:[%s5236_s3 + $0x590] sm:$0xff] %v1793_v0  ;;  %v1904_v17 = vld [vmem:[%s5233_s0 + $0x378] sm:$0xff]  ;;  %v1956_v0 = vmul.f32 %v3361_v48, %v1888_v53  ;;  %2013 = vst [vmem:[%s5236_s3 + $0x98] sm:$0xff] %v1949_v19  ;;  %v1968_v53 = vmul.f32 %v3361_v48, %v1900_v54 }
 0x318   :  { %v1729_v59 = vld [vmem:[%s5233_s0 + $0x610] sm:$0xff]  ;;  %v1796_v26 = vmul.f32 %v3359_v46, %v1728_v33  ;;  %1858 = vst [vmem:[%s5236_s3 + $0x5b0] sm:$0xff] %v1794_v24  ;;  %v1908_v8 = vld [vmem:[%s5233_s0 + $0x3f8] sm:$0xff]  ;;  %2014 = vst [vmem:[%s5236_s3 + $0xb8] sm:$0xff] %v1950_v34 }
 0x319   :  { %v1730_v30 = vld [vmem:[%s5233_s0 + $0x630] sm:$0xff]  ;;  %v1797_v39 = vmul.f32 %v3359_v46, %v1729_v59  ;;  %1859 = vst [vmem:[%s5236_s3 + $0x5d0] sm:$0xff] %v1795_v25  ;;  %v1891_v59 = vld [vmem:[%s5233_s0 + $0x1d8] sm:$0xff]  ;;  %2015 = vst [vmem:[%s5236_s3 + $0xd8] sm:$0xff] %v1951_v11  ;;  %v1976_v3 = vmul.f32 %v3361_v48, %v1908_v8 }
 0x31a   :  { %v1731_v29 = vld [vmem:[%s5233_s0 + $0x650] sm:$0xff]  ;;  %v1798_v47 = vmul.f32 %v3359_v46, %v1730_v30  ;;  %1860 = vst [vmem:[%s5236_s3 + $0x5f0] sm:$0xff] %v1796_v26  ;;  %v1892_v30 = vld [vmem:[%s5233_s0 + $0x1f8] sm:$0xff]  ;;  %2017 = vst [vmem:[%s5236_s3 + $0x118] sm:$0xff] %v1953_v21 }
 0x31b   :  { %v1732_v41 = vld [vmem:[%s5233_s0 + $0x670] sm:$0xff]  ;;  %v1799_v2 = vmul.f32 %v3359_v46, %v1731_v29  ;;  %1861 = vst [vmem:[%s5236_s3 + $0x610] sm:$0xff] %v1797_v39  ;;  %v1909_v24 = vld [vmem:[%s5233_s0 + $0x418] sm:$0xff]  ;;  %v1960_v39 = vmul.f32 %v3361_v48, %v1892_v30  ;;  %2018 = vst [vmem:[%s5236_s3 + $0x138] sm:$0xff] %v1954_v22 }
 0x31c   :  { %v1733_v5 = vld [vmem:[%s5233_s0 + $0x690] sm:$0xff]  ;;  %v1800_v38 = vmul.f32 %v3359_v46, %v1732_v41  ;;  %1862 = vst [vmem:[%s5236_s3 + $0x630] sm:$0xff] %v1798_v47  ;;  %v1910_v25 = vld [vmem:[%s5233_s0 + $0x438] sm:$0xff]  ;;  %2019 = vst [vmem:[%s5236_s3 + $0x158] sm:$0xff] %v1955_v23 }
 0x31d   :  { %v1734_v35 = vld [vmem:[%s5233_s0 + $0x6b0] sm:$0xff]  ;;  %v1801_v42 = vmul.f32 %v3359_v46, %v1733_v5  ;;  %1863 = vst [vmem:[%s5236_s3 + $0x650] sm:$0xff] %v1799_v2  ;;  %v1896_v5 = vld [vmem:[%s5233_s0 + $0x278] sm:$0xff]  ;;  %2020 = vst [vmem:[%s5236_s3 + $0x178] sm:$0xff] %v1956_v0 }
 0x31e   :  { %v1735_v12 = vld [vmem:[%s5233_s0 + $0x6d0] sm:$0xff]  ;;  %v1802_v15 = vmul.f32 %v3359_v46, %v1734_v35  ;;  %1864 = vst [vmem:[%s5236_s3 + $0x670] sm:$0xff] %v1800_v38  ;;  %v1897_v35 = vld [vmem:[%s5233_s0 + $0x298] sm:$0xff]  ;;  %2021 = vst [vmem:[%s5236_s3 + $0x198] sm:$0xff] %v1957_v63 }
 0x31f   :  { %v1736_v14 = vld [vmem:[%s5233_s0 + $0x6f0] sm:$0xff]  ;;  %v1803_v43 = vmul.f32 %v3359_v46, %v1735_v12  ;;  %1865 = vst [vmem:[%s5236_s3 + $0x690] sm:$0xff] %v1801_v42  ;;  %v1898_v12 = vld [vmem:[%s5233_s0 + $0x2b8] sm:$0xff]  ;;  %v1964_v42 = vmul.f32 %v3361_v48, %v1896_v5  ;;  %v1965_v6 = vmul.f32 %v3361_v48, %v1897_v35  ;;  %2022 = vst [vmem:[%s5236_s3 + $0x1b8] sm:$0xff] %v1958_v4 }
 0x320   :  { %v1737_v45 = vld [vmem:[%s5233_s0 + $0x710] sm:$0xff]  ;;  %v1804_v60 = vmul.f32 %v3359_v46, %v1736_v14  ;;  %1866 = vst [vmem:[%s5236_s3 + $0x6b0] sm:$0xff] %v1802_v15  ;;  %v1899_v14 = vld [vmem:[%s5233_s0 + $0x2d8] sm:$0xff]  ;;  %v1966_v50 = vmul.f32 %v3361_v48, %v1898_v12  ;;  %2024 = vst [vmem:[%s5236_s3 + $0x1f8] sm:$0xff] %v1960_v39  ;;  %v1977_v12 = vmul.f32 %v3361_v48, %v1909_v24 }
 0x321   :  { %v1738_v9 = vld [vmem:[%s5233_s0 + $0x730] sm:$0xff]  ;;  %v1805_v32 = vmul.f32 %v3359_v46, %v1737_v45  ;;  %1867 = vst [vmem:[%s5236_s3 + $0x6d0] sm:$0xff] %v1803_v43  ;;  %v1948_v45 = vmul.f32 %v3361_v48, %v1880_v36  ;;  %v1911_v26 = vld [vmem:[%s5233_s0 + $0x458] sm:$0xff]  ;;  %v1959_v36 = vmul.f32 %v3361_v48, %v1891_v59  ;;  %v1967_v31 = vmul.f32 %v3361_v48, %v1899_v14 }
 0x322   :  { %v1739_v1 = vld [vmem:[%s5233_s0 + $0x750] sm:$0xff]  ;;  %v1806_v33 = vmul.f32 %v3359_v46, %v1738_v9  ;;  %1868 = vst [vmem:[%s5236_s3 + $0x6f0] sm:$0xff] %v1804_v60  ;;  %v1901_v9 = vld [vmem:[%s5233_s0 + $0x318] sm:$0xff]  ;;  %v1972_v59 = vmul.f32 %v3361_v48, %v1904_v17  ;;  %2026 = vst [vmem:[%s5236_s3 + $0x238] sm:$0xff] %v1962_v20  ;;  %v1978_v14 = vmul.f32 %v3361_v48, %v1910_v25 }
 0x323   :  { %v1740_v58 = vld [vmem:[%s5233_s0 + $0x770] sm:$0xff]  ;;  %v1807_v40 = vmul.f32 %v3359_v46, %v1739_v1  ;;  %1869 = vst [vmem:[%s5236_s3 + $0x710] sm:$0xff] %v1805_v32  ;;  %v1902_v1 = vld [vmem:[%s5233_s0 + $0x338] sm:$0xff]  ;;  %2012 = vst [vmem:[%s5236_s3 + $0x78] sm:$0xff] %v1948_v45  ;;  %v1979_v54 = vmul.f32 %v3361_v48, %v1911_v26 }
 0x324   :  { %v1741_v16 = vld [vmem:[%s5233_s0 + $0x790] sm:$0xff]  ;;  %v1808_v55 = vmul.f32 %v3359_v46, %v1740_v58  ;;  %1870 = vst [vmem:[%s5236_s3 + $0x730] sm:$0xff] %v1806_v33  ;;  %v1903_v58 = vld [vmem:[%s5233_s0 + $0x358] sm:$0xff]  ;;  %2023 = vst [vmem:[%s5236_s3 + $0x1d8] sm:$0xff] %v1959_v36  ;;  %v1970_v51 = vmul.f32 %v3361_v48, %v1902_v1 }
 0x325   :  { %v1742_v18 = vld [vmem:[%s5233_s0 + $0x7b0] sm:$0xff]  ;;  %v1809_v29 = vmul.f32 %v3359_v46, %v1741_v16  ;;  %1871 = vst [vmem:[%s5236_s3 + $0x750] sm:$0xff] %v1807_v40  ;;  %v1952_v16 = vmul.f32 %v3361_v48, %v1884_v28  ;;  %v1912_v27 = vld [vmem:[%s5233_s0 + $0x478] sm:$0xff]  ;;  %v1963_v28 = vmul.f32 %v3361_v48, %v1895_v52  ;;  %v1971_v57 = vmul.f32 %v3361_v48, %v1903_v58 }
 0x326   :  { %v1743_v10 = vld [vmem:[%s5233_s0 + $0x7d0] sm:$0xff]  ;;  %v1810_v41 = vmul.f32 %v3359_v46, %v1742_v18  ;;  %1872 = vst [vmem:[%s5236_s3 + $0x770] sm:$0xff] %v1808_v55  ;;  %v1905_v18 = vld [vmem:[%s5233_s0 + $0x398] sm:$0xff]  ;;  %v1969_v55 = vmul.f32 %v3361_v48, %v1901_v9  ;;  %2028 = vst [vmem:[%s5236_s3 + $0x278] sm:$0xff] %v1964_v42  ;;  %v1980_v56 = vmul.f32 %v3361_v48, %v1912_v27 }
 0x327   :  { %v1744_v44 = vld [vmem:[%s5233_s0 + $0x7f0] sm:$0xff]  ;;  %v1811_v61 = vmul.f32 %v3359_v46, %v1743_v10  ;;  %1873 = vst [vmem:[%s5236_s3 + $0x790] sm:$0xff] %v1809_v29  ;;  %v1906_v10 = vld [vmem:[%s5233_s0 + $0x3b8] sm:$0xff]  ;;  %2016 = vst [vmem:[%s5236_s3 + $0xf8] sm:$0xff] %v1952_v16 }
 0x328   :  { %v1812_v62 = vmul.f32 %v3359_v46, %v1744_v44  ;;  %v1893_v46 = vld [vmem:[%s5233_s0 + $0x218] sm:$0xff]  ;;  %1874 = vst [vmem:[%s5236_s3 + $0x7b0] sm:$0xff] %v1810_v41  ;;  %2027 = vst [vmem:[%s5236_s3 + $0x258] sm:$0xff] %v1963_v28 }
 0x329   :  { %1875 = vst [vmem:[%s5236_s3 + $0x7d0] sm:$0xff] %v1811_v61  ;;  %v1907_v44 = vld [vmem:[%s5233_s0 + $0x3d8] sm:$0xff]  ;;  %v1961_v49 = vmul.f32 %v3361_v48, %v1893_v46  ;;  %v1973_v61 = vmul.f32 %v3361_v48, %v1905_v18  ;;  %2029 = vst [vmem:[%s5236_s3 + $0x298] sm:$0xff] %v1965_v6 }
 0x32a   :  { %1876 = vst [vmem:[%s5236_s3 + $0x7f0] sm:$0xff] %v1812_v62  ;;  %v1913_v47 = vld [vmem:[%s5233_s0 + $0x498] sm:$0xff]  ;;  %v1974_v62 = vmul.f32 %v3361_v48, %v1906_v10  ;;  %v1975_v46 = vmul.f32 %v3361_v48, %v1907_v44  ;;  %2030 = vst [vmem:[%s5236_s3 + $0x2b8] sm:$0xff] %v1966_v50 }
 0x32b   :  { %v1914_v2 = vld [vmem:[%s5233_s0 + $0x4b8] sm:$0xff]  ;;  %2025 = vst [vmem:[%s5236_s3 + $0x218] sm:$0xff] %v1961_v49  ;;  %2031 = vst [vmem:[%s5236_s3 + $0x2d8] sm:$0xff] %v1967_v31  ;;  %v1981_v9 = vmul.f32 %v3361_v48, %v1913_v47 }
 0x32c   :  { %v1915_v38 = vld [vmem:[%s5233_s0 + $0x4d8] sm:$0xff]  ;;  %2032 = vst [vmem:[%s5236_s3 + $0x2f8] sm:$0xff] %v1968_v53  ;;  %2033 = vst [vmem:[%s5236_s3 + $0x318] sm:$0xff] %v1969_v55  ;;  %v1982_v1 = vmul.f32 %v3361_v48, %v1914_v2 }
 0x32d   :  { %v1916_v13 = vld [vmem:[%s5233_s0 + $0x4f8] sm:$0xff]  ;;  %2034 = vst [vmem:[%s5236_s3 + $0x338] sm:$0xff] %v1970_v51  ;;  %2035 = vst [vmem:[%s5236_s3 + $0x358] sm:$0xff] %v1971_v57  ;;  %v1983_v58 = vmul.f32 %v3361_v48, %v1915_v38 }
 0x32e   :  { %v1917_v15 = vld [vmem:[%s5233_s0 + $0x518] sm:$0xff]  ;;  %2036 = vst [vmem:[%s5236_s3 + $0x378] sm:$0xff] %v1972_v59  ;;  %v1984_v17 = vmul.f32 %v3361_v48, %v1916_v13  ;;  %2037 = vst [vmem:[%s5236_s3 + $0x398] sm:$0xff] %v1973_v61 }
 0x32f   :  { %v1918_v43 = vld [vmem:[%s5233_s0 + $0x538] sm:$0xff]  ;;  %2038 = vst [vmem:[%s5236_s3 + $0x3b8] sm:$0xff] %v1974_v62  ;;  %2039 = vst [vmem:[%s5236_s3 + $0x3d8] sm:$0xff] %v1975_v46  ;;  %v1985_v16 = vmul.f32 %v3361_v48, %v1917_v15 }
 0x330   :  { %v1919_v60 = vld [vmem:[%s5233_s0 + $0x558] sm:$0xff]  ;;  %2040 = vst [vmem:[%s5236_s3 + $0x3f8] sm:$0xff] %v1976_v3  ;;  %v1986_v18 = vmul.f32 %v3361_v48, %v1918_v43  ;;  %2041 = vst [vmem:[%s5236_s3 + $0x418] sm:$0xff] %v1977_v12 }
 0x331   :  { %v1920_v32 = vld [vmem:[%s5233_s0 + $0x578] sm:$0xff]  ;;  %v1987_v10 = vmul.f32 %v3361_v48, %v1919_v60  ;;  %2042 = vst [vmem:[%s5236_s3 + $0x438] sm:$0xff] %v1978_v14  ;;  %2043 = vst [vmem:[%s5236_s3 + $0x458] sm:$0xff] %v1979_v54 }
 0x332   :  { %v1921_v33 = vld [vmem:[%s5233_s0 + $0x598] sm:$0xff]  ;;  %v1988_v44 = vmul.f32 %v3361_v48, %v1920_v32  ;;  %2044 = vst [vmem:[%s5236_s3 + $0x478] sm:$0xff] %v1980_v56  ;;  %2045 = vst [vmem:[%s5236_s3 + $0x498] sm:$0xff] %v1981_v9 }
 0x333   :  { %v1922_v40 = vld [vmem:[%s5233_s0 + $0x5b8] sm:$0xff]  ;;  %v1989_v23 = vmul.f32 %v3361_v48, %v1921_v33  ;;  %2046 = vst [vmem:[%s5236_s3 + $0x4b8] sm:$0xff] %v1982_v1  ;;  %2047 = vst [vmem:[%s5236_s3 + $0x4d8] sm:$0xff] %v1983_v58 }
 0x334   :  { %v1923_v30 = vld [vmem:[%s5233_s0 + $0x5d8] sm:$0xff]  ;;  %v1990_v0 = vmul.f32 %v3361_v48, %v1922_v40  ;;  %2048 = vst [vmem:[%s5236_s3 + $0x4f8] sm:$0xff] %v1984_v17  ;;  %2049 = vst [vmem:[%s5236_s3 + $0x518] sm:$0xff] %v1985_v16 }
 0x335   :  { %v1924_v29 = vld [vmem:[%s5233_s0 + $0x5f8] sm:$0xff]  ;;  %v1991_v24 = vmul.f32 %v3361_v48, %v1923_v30  ;;  %2050 = vst [vmem:[%s5236_s3 + $0x538] sm:$0xff] %v1986_v18  ;;  %2051 = vst [vmem:[%s5236_s3 + $0x558] sm:$0xff] %v1987_v10 }
 0x336   :  { %v1925_v41 = vld [vmem:[%s5233_s0 + $0x618] sm:$0xff]  ;;  %v1992_v25 = vmul.f32 %v3361_v48, %v1924_v29  ;;  %2052 = vst [vmem:[%s5236_s3 + $0x578] sm:$0xff] %v1988_v44  ;;  %2053 = vst [vmem:[%s5236_s3 + $0x598] sm:$0xff] %v1989_v23 }
 0x337   :  { %v1926_v52 = vld [vmem:[%s5233_s0 + $0x638] sm:$0xff]  ;;  %v1993_v4 = vmul.f32 %v3361_v48, %v1925_v41  ;;  %2054 = vst [vmem:[%s5236_s3 + $0x5b8] sm:$0xff] %v1990_v0  ;;  %2055 = vst [vmem:[%s5236_s3 + $0x5d8] sm:$0xff] %v1991_v24 }
 0x338   :  { %v1927_v5 = vld [vmem:[%s5233_s0 + $0x658] sm:$0xff]  ;;  %v1994_v36 = vmul.f32 %v3361_v48, %v1926_v52  ;;  %2056 = vst [vmem:[%s5236_s3 + $0x5f8] sm:$0xff] %v1992_v25 }
 0x339   :  { %v1928_v35 = vld [vmem:[%s5233_s0 + $0x678] sm:$0xff]  ;;  %v1995_v39 = vmul.f32 %v3361_v48, %v1927_v5  ;;  %2057 = vst [vmem:[%s5236_s3 + $0x618] sm:$0xff] %v1993_v4 }
 0x33a   :  { %v1929_v7 = vld [vmem:[%s5233_s0 + $0x698] sm:$0xff]  ;;  %v1996_v47 = vmul.f32 %v3361_v48, %v1928_v35  ;;  %2058 = vst [vmem:[%s5236_s3 + $0x638] sm:$0xff] %v1994_v36 }
 0x33b   :  { %v1930_v37 = vld [vmem:[%s5233_s0 + $0x6b8] sm:$0xff]  ;;  %v1997_v2 = vmul.f32 %v3361_v48, %v1929_v7  ;;  %2059 = vst [vmem:[%s5236_s3 + $0x658] sm:$0xff] %v1995_v39 }
 0x33c   :  { %v1931_v45 = vld [vmem:[%s5233_s0 + $0x6d8] sm:$0xff]  ;;  %v1998_v38 = vmul.f32 %v3361_v48, %v1930_v37  ;;  %2060 = vst [vmem:[%s5236_s3 + $0x678] sm:$0xff] %v1996_v47 }
 0x33d   :  { %v1932_v19 = vld [vmem:[%s5233_s0 + $0x6f8] sm:$0xff]  ;;  %v1999_v13 = vmul.f32 %v3361_v48, %v1931_v45  ;;  %2061 = vst [vmem:[%s5236_s3 + $0x698] sm:$0xff] %v1997_v2 }
 0x33e   :  { %v1933_v34 = vld [vmem:[%s5233_s0 + $0x718] sm:$0xff]  ;;  %v2000_v49 = vmul.f32 %v3361_v48, %v1932_v19  ;;  %2062 = vst [vmem:[%s5236_s3 + $0x6b8] sm:$0xff] %v1998_v38 }
 0x33f   :  { %v1934_v11 = vld [vmem:[%s5233_s0 + $0x738] sm:$0xff]  ;;  %v2001_v20 = vmul.f32 %v3361_v48, %v1933_v34  ;;  %2063 = vst [vmem:[%s5236_s3 + $0x6d8] sm:$0xff] %v1999_v13 }
 0x340   :  { %v1935_v8 = vld [vmem:[%s5233_s0 + $0x758] sm:$0xff]  ;;  %v2002_v28 = vmul.f32 %v3361_v48, %v1934_v11  ;;  %2064 = vst [vmem:[%s5236_s3 + $0x6f8] sm:$0xff] %v2000_v49 }
 0x341   :  { %v1936_v21 = vld [vmem:[%s5233_s0 + $0x778] sm:$0xff]  ;;  %v2003_v42 = vmul.f32 %v3361_v48, %v1935_v8  ;;  %2065 = vst [vmem:[%s5236_s3 + $0x718] sm:$0xff] %v2001_v20 }
 0x342   :  { %v1937_v22 = vld [vmem:[%s5233_s0 + $0x798] sm:$0xff]  ;;  %v2004_v15 = vmul.f32 %v3361_v48, %v1936_v21  ;;  %2066 = vst [vmem:[%s5236_s3 + $0x738] sm:$0xff] %v2002_v28 }
 0x343   :  { %v1938_v26 = vld [vmem:[%s5233_s0 + $0x7b8] sm:$0xff]  ;;  %v2005_v43 = vmul.f32 %v3361_v48, %v1937_v22  ;;  %2067 = vst [vmem:[%s5236_s3 + $0x758] sm:$0xff] %v2003_v42 }
 0x344   :  { %v1939_v27 = vld [vmem:[%s5233_s0 + $0x7d8] sm:$0xff]  ;;  %v2006_v60 = vmul.f32 %v3361_v48, %v1938_v26  ;;  %2068 = vst [vmem:[%s5236_s3 + $0x778] sm:$0xff] %v2004_v15 }
 0x345   :  { %v1940_v63 = vld [vmem:[%s5233_s0 + $0x7f8] sm:$0xff]  ;;  %v2007_v6 = vmul.f32 %v3361_v48, %v1939_v27  ;;  %2069 = vst [vmem:[%s5236_s3 + $0x798] sm:$0xff] %v2005_v43 }
 0x346   :  { %v2008_v50 = vmul.f32 %v3361_v48, %v1940_v63  ;;  %2070 = vst [vmem:[%s5236_s3 + $0x7b8] sm:$0xff] %v2006_v60 }
 0x347   :  { %2071 = vst [vmem:[%s5236_s3 + $0x7d8] sm:$0xff] %v2007_v6 }
 0x348   :  { %2072 = vst [vmem:[%s5236_s3 + $0x7f8] sm:$0xff] %v2008_v50 }

</bundles_post_ra>
